<compile_context>
chip_gen: v7x
topology: tpu7x:2x2x1
jax: 0.10.0
libtpu: 0.0.40
codegen_flags: <defaults>
</compile_context>

<pallas_src>
import jax
import jax.numpy as jnp
from jax.experimental import pallas as pl
from jax.experimental.pallas import tpu as pltpu

KH = KW = 3   # kernel size (stride=1, padding=1 fixed, module defaults)
_LANE = 128
_MAX_UNROLL_ROWS = 32   # upper bound on the fully-unrolled in-kernel row loop


def _vmem_capacity_bytes():
    """Per-generation VMEM capacity (v5e/v6e: 128 MiB, v7x: 64 MiB)."""
    try:
        cap = getattr(pltpu.get_tpu_info(), "vmem_capacity_bytes", None)
        if cap:
            return int(cap)
    except Exception:
        pass
    return 64 * 1024 * 1024   # conservative (v7x per-core) fallback


def _choose_tiles(H, W, NC, itemsize=4):
    """Pick (rows-per-block TH, lanes-per-block TB).

    TB is a multiple of 128 (channel lane-groups); TH <= _MAX_UNROLL_ROWS so
    the in-kernel row loop stays fully unrolled with static indices.  Blocks
    are sized from the per-generation VMEM capacity so double-buffered
    input+output blocks fit with headroom, and at least two grid steps are
    kept whenever possible so both v7x TensorCores get work.
    """
    vmem_cap = _vmem_capacity_bytes()
    # ~40% of VMEM for live blocks; /4 -> per-block budget (double-buffered
    # input + output blocks).
    block_budget = (vmem_cap * 2) // 5 // 4

    Wp = W + 2
    lane_groups = -(-NC // _LANE)
    row_bytes_per_group = Wp * _LANE * itemsize

    TH = max(1, min(H, _MAX_UNROLL_ROWS))
    tb_groups = max(1, block_budget // (TH * row_bytes_per_group))
    tb_groups = min(tb_groups, lane_groups)
    while TH > 1 and TH * row_bytes_per_group * tb_groups > block_budget:
        TH = max(1, TH // 2)

    def n_steps(th, g):
        return (-(-lane_groups // g)) * (-(-H // th))

    if n_steps(TH, tb_groups) < 2:        # keep both v7x TensorCores busy
        if lane_groups > 1:
            tb_groups = -(-lane_groups // 2)
        elif H > 1 and TH > 1:
            TH = -(-TH // 2)

    return TH, tb_groups * _LANE


def _dwconv3x3_kernel(w_ref, b_ref, x_ref, xt_ref, xb_ref, o_ref):
    # w_ref : (9,)  f32 SMEM   flattened 3x3 weights (row-major, PyTorch order)
    # b_ref : (1,)  f32 SMEM   bias
    # x_ref : (TH, W+2, TB)    input rows, W zero-padded by one column per side
    # xt_ref: (1,  W+2, TB)    row just above the block (clamped at the top edge)
    # xb_ref: (1,  W+2, TB)    row just below the block (clamped at the bottom edge)
    # o_ref : (TH, W,   TB)    output rows
    TH, W, _ = o_ref.shape
    f32 = jnp.float32

    j = pl.program_id(1)
    # Halo rows outside the image must contribute zero (Conv2d padding=1); the
    # clamped halo DMAs hold an in-bounds row there, so scale them away.
    top_scale = (j > 0).astype(f32)
    bot_scale = (j < pl.num_programs(1) - 1).astype(f32)

    w00, w01, w02 = w_ref[0], w_ref[1], w_ref[2]
    w10, w11, w12 = w_ref[3], w_ref[4], w_ref[5]
    w20, w21, w22 = w_ref[6], w_ref[7], w_ref[8]
    b = b_ref[0]

    # Fully unrolled row loop: static slices only; the per-row accumulation
    # stays in vector registers (no whole-block VMEM accumulator, no scratch,
    # no memset, no interior copy).
    for r in range(TH):
        if r == 0:
            top = xt_ref[0].astype(f32) * top_scale
        else:
            top = x_ref[r - 1].astype(f32)
        mid = x_ref[r].astype(f32)
        if r == TH - 1:
            bot = xb_ref[0].astype(f32) * bot_scale
        else:
            bot = x_ref[r + 1].astype(f32)

        # Vertical (kh) combine per kernel column; bias folded into the middle
        # column so there is no separate zero-init or bias pass.
        t0 = w00 * top + w10 * mid + w20 * bot          # taps from column c-1
        t1 = w01 * top + w11 * mid + w21 * bot + b      # taps from column c
        t2 = w02 * top + w12 * mid + w22 * bot          # taps from column c+1

        # Horizontal (kw) combine: the zero column padding in HBM supplies the
        # boundary zeros, so the shifted reads are plain static slices (no
        # roll, no wraparound masks, no padded scratch).
        o_ref[r] = (t0[0:W, :] + t1[1:W + 1, :] + t2[2:W + 2, :]).astype(o_ref.dtype)


def depthwise_conv_forward(x, weight, bias):
    """x: (N, C, H, W). weight: (3, 3). bias: (1,). Returns (N, C, H, W)."""
    N, C, H, W = x.shape
    NC = N * C
    Wp = W + 2

    TH, TB = _choose_tiles(H, W, NC, itemsize=x.dtype.itemsize)
    H_pad = -(-H // TH) * TH
    NC_pad = -(-NC // TB) * TB

    # Layout plumbing: a single fused pad (channel groups, bottom rows, one
    # zero column left/right of W) applied *before* the transpose so XLA emits
    # one HBM copy; the folded channel axis lands on the 128-lane dimension.
    x_flat = x.reshape(NC, H, W)
    x_flat = jnp.pad(x_flat, ((0, NC_pad - NC), (0, H_pad - H), (1, 1)))
    x_cl = jnp.transpose(x_flat, (1, 2, 0))            # (H_pad, W+2, NC_pad)

    w_flat = weight.reshape(-1).astype(jnp.float32)    # (9,)
    b_flat = bias.reshape(-1).astype(jnp.float32)      # (1,)

    nc_steps = NC_pad // TB
    h_steps = H_pad // TH
    grid = (nc_steps, h_steps)

    # VMEM accounting: double-buffered main input + output blocks + two halo
    # rows, with headroom, bounded by the per-generation capacity.
    itemsize = x.dtype.itemsize
    need = 2 * (TH * Wp * TB * itemsize        # input block
                + TH * W * TB * itemsize       # output block
                + 2 * Wp * TB * itemsize)      # halo rows
    vmem_cap = _vmem_capacity_bytes()
    vmem_limit = int(min(0.9 * vmem_cap, max(32 * 1024 * 1024, 2 * need)))

    out_cl = pl.pallas_call(
        _dwconv3x3_kernel,
        out_shape=jax.ShapeDtypeStruct((H_pad, W, NC_pad), x.dtype),
        grid_spec=pltpu.PrefetchScalarGridSpec(
            num_scalar_prefetch=0,
            grid=grid,
            in_specs=[
                pl.BlockSpec(memory_space=pltpu.MemorySpace.SMEM),   # weights (9,)
                pl.BlockSpec(memory_space=pltpu.MemorySpace.SMEM),   # bias (1,)
                # main row block
                pl.BlockSpec((TH, Wp, TB), lambda i, j: (j, 0, i)),
                # halo row above (clamped; zero-scaled in-kernel at the top edge)
                pl.BlockSpec((1, Wp, TB),
                             lambda i, j: (jnp.maximum(j * TH - 1, 0), 0, i)),
                # halo row below (clamped; zero-scaled in-kernel at the bottom edge)
                pl.BlockSpec((1, Wp, TB),
                             lambda i, j: (jnp.minimum((j + 1) * TH, H_pad - 1), 0, i)),
            ],
            out_specs=pl.BlockSpec((TH, W, TB), lambda i, j: (j, 0, i)),
        ),
        compiler_params=pltpu.CompilerParams(
            dimension_semantics=("parallel", "parallel"),
            vmem_limit_bytes=vmem_limit,
        ),
    )(w_flat, b_flat, x_cl, x_cl, x_cl)

    out = jnp.transpose(out_cl[:H, :, :NC], (2, 0, 1)).reshape(N, C, H, W)
    return out


def _reference(x, weight, bias):
    # Pure-JAX reference of the same semantics (sanity check).
    N, C, H, W = x.shape
    xf = x.reshape(N * C, 1, H, W)
    w = weight.reshape(1, 1, KH, KW).astype(x.dtype)
    y = jax.lax.conv_general_dilated(
        xf, w, window_strides=(1, 1), padding=((1, 1), (1, 1)),
        dimension_numbers=("NCHW", "OIHW", "NCHW"))
    y = y + bias.reshape(1, 1, 1, 1)
    return y.reshape(N, C, H, W)


if __name__ == "__main__":
    key = jax.random.PRNGKey(0)
    kx, kw, kb, kx2 = jax.random.split(key, 4)

    # Deterministic parameter init (Conv2d(1, 1, 3, 3) -> weight (3,3), bias (1,)).
    weight = jax.random.normal(kw, (KH, KW), dtype=jnp.float32) * 0.1
    bias = jax.random.normal(kb, (1,), dtype=jnp.float32) * 0.1

    fwd = jax.jit(depthwise_conv_forward)

    # Case 1: N*C <= 128 -> exercises the row-block (H) grid axis + halos.
    N, C, H, W = 2, 4, 16, 16
    x = jax.random.normal(kx, (N, C, H, W), dtype=jnp.float32)
    y = jax.block_until_ready(fwd(x, weight, bias))
    y_ref = _reference(x, weight, bias)
    assert y.shape == (N, C, H, W)
    assert jnp.allclose(y, y_ref, atol=1e-5, rtol=1e-5), "mismatch vs reference"

    # Case 2: N*C = 192 (not a multiple of 128) -> exercises channel padding
    # and the multi-lane-group grid axis.
    N2, C2 = 2, 96
    x2 = jax.random.normal(kx2, (N2, C2, H, W), dtype=jnp.float32)
    y2 = jax.block_until_ready(fwd(x2, weight, bias))
    y2_ref = _reference(x2, weight, bias)
    assert jnp.allclose(y2, y2_ref, atol=1e-5, rtol=1e-5), "mismatch vs reference (tiled)"

    print("KERNEL_OK")
</pallas_src>

<mosaic_0001>
module attributes {stable_mosaic.version = 11 : i64} {
  func.func @_dwconv3x3_kernel(%arg0: i32, %arg1: i32, %arg2: memref<9xf32, #tpu.memory_space<smem>>, %arg3: memref<1xf32, #tpu.memory_space<smem>>, %arg4: memref<8x18x128xf32, #tpu.memory_space<vmem>>, %arg5: memref<1x18x128xf32, #tpu.memory_space<vmem>>, %arg6: memref<1x18x128xf32, #tpu.memory_space<vmem>>, %arg7: memref<8x16x128xf32, #tpu.memory_space<vmem>>) attributes {dimension_semantics = [#tpu.dimension_semantics<parallel>, #tpu.dimension_semantics<parallel>], iteration_bounds = array<i64: 1, 2>, scalar_prefetch = 0 : i64, scratch_operands = 0 : i64, tpu.core_type = #tpu.core_type<tc>, window_params = [{transform_indices = @transform_0, window_bounds = array<i64: 9>}, {transform_indices = @transform_1, window_bounds = array<i64: 1>}, {transform_indices = @transform_2, window_bounds = array<i64: 8, 18, 128>}, {transform_indices = @transform_3, window_bounds = array<i64: 1, 18, 128>}, {transform_indices = @transform_4, window_bounds = array<i64: 1, 18, 128>}, {transform_indices = @transform_5, window_bounds = array<i64: 8, 16, 128>}]} {
    %c0_i32 = arith.constant 0 : i32
    %0 = arith.cmpi sgt, %arg1, %c0_i32 : i32
    %1 = arith.extui %0 : i1 to i32
    %2 = arith.sitofp %1 : i32 to f32
    %c1_i32 = arith.constant 1 : i32
    %3 = arith.cmpi slt, %arg1, %c1_i32 : i32
    %4 = arith.extui %3 : i1 to i32
    %5 = arith.sitofp %4 : i32 to f32
    %c0 = arith.constant 0 : index
    %6 = memref.load %arg2[%c0] : memref<9xf32, #tpu.memory_space<smem>>
    %c1 = arith.constant 1 : index
    %7 = memref.load %arg2[%c1] : memref<9xf32, #tpu.memory_space<smem>>
    %c2 = arith.constant 2 : index
    %8 = memref.load %arg2[%c2] : memref<9xf32, #tpu.memory_space<smem>>
    %c3 = arith.constant 3 : index
    %9 = memref.load %arg2[%c3] : memref<9xf32, #tpu.memory_space<smem>>
    %c4 = arith.constant 4 : index
    %10 = memref.load %arg2[%c4] : memref<9xf32, #tpu.memory_space<smem>>
    %c5 = arith.constant 5 : index
    %11 = memref.load %arg2[%c5] : memref<9xf32, #tpu.memory_space<smem>>
    %c6 = arith.constant 6 : index
    %12 = memref.load %arg2[%c6] : memref<9xf32, #tpu.memory_space<smem>>
    %c7 = arith.constant 7 : index
    %13 = memref.load %arg2[%c7] : memref<9xf32, #tpu.memory_space<smem>>
    %c8 = arith.constant 8 : index
    %14 = memref.load %arg2[%c8] : memref<9xf32, #tpu.memory_space<smem>>
    %c0_0 = arith.constant 0 : index
    %15 = memref.load %arg3[%c0_0] : memref<1xf32, #tpu.memory_space<smem>>
    %c0_1 = arith.constant 0 : index
    %c0_2 = arith.constant 0 : index
    %c0_3 = arith.constant 0 : index
    %16 = vector.load %arg5[%c0_1, %c0_2, %c0_3] : memref<1x18x128xf32, #tpu.memory_space<vmem>>, vector<1x18x128xf32>
    %17 = vector.shape_cast %16 : vector<1x18x128xf32> to vector<18x128xf32>
    %18 = vector.broadcast %2 : f32 to vector<18x128xf32>
    %19 = arith.mulf %17, %18 : vector<18x128xf32>
    %c0_4 = arith.constant 0 : index
    %c0_5 = arith.constant 0 : index
    %c0_6 = arith.constant 0 : index
    %20 = vector.load %arg4[%c0_4, %c0_5, %c0_6] : memref<8x18x128xf32, #tpu.memory_space<vmem>>, vector<1x18x128xf32>
    %21 = vector.shape_cast %20 : vector<1x18x128xf32> to vector<18x128xf32>
    %c1_7 = arith.constant 1 : index
    %c0_8 = arith.constant 0 : index
    %c0_9 = arith.constant 0 : index
    %22 = vector.load %arg4[%c1_7, %c0_8, %c0_9] : memref<8x18x128xf32, #tpu.memory_space<vmem>>, vector<1x18x128xf32>
    %23 = vector.shape_cast %22 : vector<1x18x128xf32> to vector<18x128xf32>
    %24 = vector.broadcast %6 : f32 to vector<18x128xf32>
    %25 = arith.mulf %24, %19 : vector<18x128xf32>
    %26 = vector.broadcast %9 : f32 to vector<18x128xf32>
    %27 = arith.mulf %26, %21 : vector<18x128xf32>
    %28 = arith.addf %25, %27 : vector<18x128xf32>
    %29 = vector.broadcast %12 : f32 to vector<18x128xf32>
    %30 = arith.mulf %29, %23 : vector<18x128xf32>
    %31 = arith.addf %28, %30 : vector<18x128xf32>
    %32 = vector.broadcast %7 : f32 to vector<18x128xf32>
    %33 = arith.mulf %32, %19 : vector<18x128xf32>
    %34 = vector.broadcast %10 : f32 to vector<18x128xf32>
    %35 = arith.mulf %34, %21 : vector<18x128xf32>
    %36 = arith.addf %33, %35 : vector<18x128xf32>
    %37 = vector.broadcast %13 : f32 to vector<18x128xf32>
    %38 = arith.mulf %37, %23 : vector<18x128xf32>
    %39 = arith.addf %36, %38 : vector<18x128xf32>
    %40 = vector.broadcast %15 : f32 to vector<18x128xf32>
    %41 = arith.addf %39, %40 : vector<18x128xf32>
    %42 = vector.broadcast %8 : f32 to vector<18x128xf32>
    %43 = arith.mulf %42, %19 : vector<18x128xf32>
    %44 = vector.broadcast %11 : f32 to vector<18x128xf32>
    %45 = arith.mulf %44, %21 : vector<18x128xf32>
    %46 = arith.addf %43, %45 : vector<18x128xf32>
    %47 = vector.broadcast %14 : f32 to vector<18x128xf32>
    %48 = arith.mulf %47, %23 : vector<18x128xf32>
    %49 = arith.addf %46, %48 : vector<18x128xf32>
    %50 = vector.extract_strided_slice %31 {offsets = [0, 0], sizes = [16, 128], strides = [1, 1]} : vector<18x128xf32> to vector<16x128xf32>
    %51 = vector.extract_strided_slice %41 {offsets = [1, 0], sizes = [16, 128], strides = [1, 1]} : vector<18x128xf32> to vector<16x128xf32>
    %52 = arith.addf %50, %51 : vector<16x128xf32>
    %53 = vector.extract_strided_slice %49 {offsets = [2, 0], sizes = [16, 128], strides = [1, 1]} : vector<18x128xf32> to vector<16x128xf32>
    %54 = arith.addf %52, %53 : vector<16x128xf32>
    %c0_10 = arith.constant 0 : index
    %c0_11 = arith.constant 0 : index
    %c0_12 = arith.constant 0 : index
    %55 = vector.load %arg7[%c0_10, %c0_11, %c0_12] : memref<8x16x128xf32, #tpu.memory_space<vmem>>, vector<1x16x128xf32>
    %56 = vector.shape_cast %55 : vector<1x16x128xf32> to vector<16x128xf32>
    %57 = vector.shape_cast %54 : vector<16x128xf32> to vector<1x16x128xf32>
    tpu.vector_store %arg7[%c0_10, %c0_11, %c0_12], %57 {strides = array<i32>} : memref<8x16x128xf32, #tpu.memory_space<vmem>>, vector<1x16x128xf32>,
    %c0_13 = arith.constant 0 : index
    %c0_14 = arith.constant 0 : index
    %c0_15 = arith.constant 0 : index
    %58 = vector.load %arg4[%c0_13, %c0_14, %c0_15] : memref<8x18x128xf32, #tpu.memory_space<vmem>>, vector<1x18x128xf32>
    %59 = vector.shape_cast %58 : vector<1x18x128xf32> to vector<18x128xf32>
    %c1_16 = arith.constant 1 : index
    %c0_17 = arith.constant 0 : index
    %c0_18 = arith.constant 0 : index
    %60 = vector.load %arg4[%c1_16, %c0_17, %c0_18] : memref<8x18x128xf32, #tpu.memory_space<vmem>>, vector<1x18x128xf32>
    %61 = vector.shape_cast %60 : vector<1x18x128xf32> to vector<18x128xf32>
    %c2_19 = arith.constant 2 : index
    %c0_20 = arith.constant 0 : index
    %c0_21 = arith.constant 0 : index
    %62 = vector.load %arg4[%c2_19, %c0_20, %c0_21] : memref<8x18x128xf32, #tpu.memory_space<vmem>>, vector<1x18x128xf32>
    %63 = vector.shape_cast %62 : vector<1x18x128xf32> to vector<18x128xf32>
    %64 = vector.broadcast %6 : f32 to vector<18x128xf32>
    %65 = arith.mulf %64, %59 : vector<18x128xf32>
    %66 = vector.broadcast %9 : f32 to vector<18x128xf32>
    %67 = arith.mulf %66, %61 : vector<18x128xf32>
    %68 = arith.addf %65, %67 : vector<18x128xf32>
    %69 = vector.broadcast %12 : f32 to vector<18x128xf32>
    %70 = arith.mulf %69, %63 : vector<18x128xf32>
    %71 = arith.addf %68, %70 : vector<18x128xf32>
    %72 = vector.broadcast %7 : f32 to vector<18x128xf32>
    %73 = arith.mulf %72, %59 : vector<18x128xf32>
    %74 = vector.broadcast %10 : f32 to vector<18x128xf32>
    %75 = arith.mulf %74, %61 : vector<18x128xf32>
    %76 = arith.addf %73, %75 : vector<18x128xf32>
    %77 = vector.broadcast %13 : f32 to vector<18x128xf32>
    %78 = arith.mulf %77, %63 : vector<18x128xf32>
    %79 = arith.addf %76, %78 : vector<18x128xf32>
    %80 = vector.broadcast %15 : f32 to vector<18x128xf32>
    %81 = arith.addf %79, %80 : vector<18x128xf32>
    %82 = vector.broadcast %8 : f32 to vector<18x128xf32>
    %83 = arith.mulf %82, %59 : vector<18x128xf32>
    %84 = vector.broadcast %11 : f32 to vector<18x128xf32>
    %85 = arith.mulf %84, %61 : vector<18x128xf32>
    %86 = arith.addf %83, %85 : vector<18x128xf32>
    %87 = vector.broadcast %14 : f32 to vector<18x128xf32>
    %88 = arith.mulf %87, %63 : vector<18x128xf32>
    %89 = arith.addf %86, %88 : vector<18x128xf32>
    %90 = vector.extract_strided_slice %71 {offsets = [0, 0], sizes = [16, 128], strides = [1, 1]} : vector<18x128xf32> to vector<16x128xf32>
    %91 = vector.extract_strided_slice %81 {offsets = [1, 0], sizes = [16, 128], strides = [1, 1]} : vector<18x128xf32> to vector<16x128xf32>
    %92 = arith.addf %90, %91 : vector<16x128xf32>
    %93 = vector.extract_strided_slice %89 {offsets = [2, 0], sizes = [16, 128], strides = [1, 1]} : vector<18x128xf32> to vector<16x128xf32>
    %94 = arith.addf %92, %93 : vector<16x128xf32>
    %c1_22 = arith.constant 1 : index
    %c0_23 = arith.constant 0 : index
    %c0_24 = arith.constant 0 : index
    %95 = vector.load %arg7[%c1_22, %c0_23, %c0_24] : memref<8x16x128xf32, #tpu.memory_space<vmem>>, vector<1x16x128xf32>
    %96 = vector.shape_cast %95 : vector<1x16x128xf32> to vector<16x128xf32>
    %97 = vector.shape_cast %94 : vector<16x128xf32> to vector<1x16x128xf32>
    tpu.vector_store %arg7[%c1_22, %c0_23, %c0_24], %97 {strides = array<i32>} : memref<8x16x128xf32, #tpu.memory_space<vmem>>, vector<1x16x128xf32>,
    %c1_25 = arith.constant 1 : index
    %c0_26 = arith.constant 0 : index
    %c0_27 = arith.constant 0 : index
    %98 = vector.load %arg4[%c1_25, %c0_26, %c0_27] : memref<8x18x128xf32, #tpu.memory_space<vmem>>, vector<1x18x128xf32>
    %99 = vector.shape_cast %98 : vector<1x18x128xf32> to vector<18x128xf32>
    %c2_28 = arith.constant 2 : index
    %c0_29 = arith.constant 0 : index
    %c0_30 = arith.constant 0 : index
    %100 = vector.load %arg4[%c2_28, %c0_29, %c0_30] : memref<8x18x128xf32, #tpu.memory_space<vmem>>, vector<1x18x128xf32>
    %101 = vector.shape_cast %100 : vector<1x18x128xf32> to vector<18x128xf32>
    %c3_31 = arith.constant 3 : index
    %c0_32 = arith.constant 0 : index
    %c0_33 = arith.constant 0 : index
    %102 = vector.load %arg4[%c3_31, %c0_32, %c0_33] : memref<8x18x128xf32, #tpu.memory_space<vmem>>, vector<1x18x128xf32>
    %103 = vector.shape_cast %102 : vector<1x18x128xf32> to vector<18x128xf32>
    %104 = vector.broadcast %6 : f32 to vector<18x128xf32>
    %105 = arith.mulf %104, %99 : vector<18x128xf32>
    %106 = vector.broadcast %9 : f32 to vector<18x128xf32>
    %107 = arith.mulf %106, %101 : vector<18x128xf32>
    %108 = arith.addf %105, %107 : vector<18x128xf32>
    %109 = vector.broadcast %12 : f32 to vector<18x128xf32>
    %110 = arith.mulf %109, %103 : vector<18x128xf32>
    %111 = arith.addf %108, %110 : vector<18x128xf32>
    %112 = vector.broadcast %7 : f32 to vector<18x128xf32>
    %113 = arith.mulf %112, %99 : vector<18x128xf32>
    %114 = vector.broadcast %10 : f32 to vector<18x128xf32>
    %115 = arith.mulf %114, %101 : vector<18x128xf32>
    %116 = arith.addf %113, %115 : vector<18x128xf32>
    %117 = vector.broadcast %13 : f32 to vector<18x128xf32>
    %118 = arith.mulf %117, %103 : vector<18x128xf32>
    %119 = arith.addf %116, %118 : vector<18x128xf32>
    %120 = vector.broadcast %15 : f32 to vector<18x128xf32>
    %121 = arith.addf %119, %120 : vector<18x128xf32>
    %122 = vector.broadcast %8 : f32 to vector<18x128xf32>
    %123 = arith.mulf %122, %99 : vector<18x128xf32>
    %124 = vector.broadcast %11 : f32 to vector<18x128xf32>
    %125 = arith.mulf %124, %101 : vector<18x128xf32>
    %126 = arith.addf %123, %125 : vector<18x128xf32>
    %127 = vector.broadcast %14 : f32 to vector<18x128xf32>
    %128 = arith.mulf %127, %103 : vector<18x128xf32>
    %129 = arith.addf %126, %128 : vector<18x128xf32>
    %130 = vector.extract_strided_slice %111 {offsets = [0, 0], sizes = [16, 128], strides = [1, 1]} : vector<18x128xf32> to vector<16x128xf32>
    %131 = vector.extract_strided_slice %121 {offsets = [1, 0], sizes = [16, 128], strides = [1, 1]} : vector<18x128xf32> to vector<16x128xf32>
    %132 = arith.addf %130, %131 : vector<16x128xf32>
    %133 = vector.extract_strided_slice %129 {offsets = [2, 0], sizes = [16, 128], strides = [1, 1]} : vector<18x128xf32> to vector<16x128xf32>
    %134 = arith.addf %132, %133 : vector<16x128xf32>
    %c2_34 = arith.constant 2 : index
    %c0_35 = arith.constant 0 : index
    %c0_36 = arith.constant 0 : index
    %135 = vector.load %arg7[%c2_34, %c0_35, %c0_36] : memref<8x16x128xf32, #tpu.memory_space<vmem>>, vector<1x16x128xf32>
    %136 = vector.shape_cast %135 : vector<1x16x128xf32> to vector<16x128xf32>
    %137 = vector.shape_cast %134 : vector<16x128xf32> to vector<1x16x128xf32>
    tpu.vector_store %arg7[%c2_34, %c0_35, %c0_36], %137 {strides = array<i32>} : memref<8x16x128xf32, #tpu.memory_space<vmem>>, vector<1x16x128xf32>,
    %c2_37 = arith.constant 2 : index
    %c0_38 = arith.constant 0 : index
    %c0_39 = arith.constant 0 : index
    %138 = vector.load %arg4[%c2_37, %c0_38, %c0_39] : memref<8x18x128xf32, #tpu.memory_space<vmem>>, vector<1x18x128xf32>
    %139 = vector.shape_cast %138 : vector<1x18x128xf32> to vector<18x128xf32>
    %c3_40 = arith.constant 3 : index
    %c0_41 = arith.constant 0 : index
    %c0_42 = arith.constant 0 : index
    %140 = vector.load %arg4[%c3_40, %c0_41, %c0_42] : memref<8x18x128xf32, #tpu.memory_space<vmem>>, vector<1x18x128xf32>
    %141 = vector.shape_cast %140 : vector<1x18x128xf32> to vector<18x128xf32>
    %c4_43 = arith.constant 4 : index
    %c0_44 = arith.constant 0 : index
    %c0_45 = arith.constant 0 : index
    %142 = vector.load %arg4[%c4_43, %c0_44, %c0_45] : memref<8x18x128xf32, #tpu.memory_space<vmem>>, vector<1x18x128xf32>
    %143 = vector.shape_cast %142 : vector<1x18x128xf32> to vector<18x128xf32>
    %144 = vector.broadcast %6 : f32 to vector<18x128xf32>
    %145 = arith.mulf %144, %139 : vector<18x128xf32>
    %146 = vector.broadcast %9 : f32 to vector<18x128xf32>
    %147 = arith.mulf %146, %141 : vector<18x128xf32>
    %148 = arith.addf %145, %147 : vector<18x128xf32>
    %149 = vector.broadcast %12 : f32 to vector<18x128xf32>
    %150 = arith.mulf %149, %143 : vector<18x128xf32>
    %151 = arith.addf %148, %150 : vector<18x128xf32>
    %152 = vector.broadcast %7 : f32 to vector<18x128xf32>
    %153 = arith.mulf %152, %139 : vector<18x128xf32>
    %154 = vector.broadcast %10 : f32 to vector<18x128xf32>
    %155 = arith.mulf %154, %141 : vector<18x128xf32>
    %156 = arith.addf %153, %155 : vector<18x128xf32>
    %157 = vector.broadcast %13 : f32 to vector<18x128xf32>
    %158 = arith.mulf %157, %143 : vector<18x128xf32>
    %159 = arith.addf %156, %158 : vector<18x128xf32>
    %160 = vector.broadcast %15 : f32 to vector<18x128xf32>
    %161 = arith.addf %159, %160 : vector<18x128xf32>
    %162 = vector.broadcast %8 : f32 to vector<18x128xf32>
    %163 = arith.mulf %162, %139 : vector<18x128xf32>
    %164 = vector.broadcast %11 : f32 to vector<18x128xf32>
    %165 = arith.mulf %164, %141 : vector<18x128xf32>
    %166 = arith.addf %163, %165 : vector<18x128xf32>
    %167 = vector.broadcast %14 : f32 to vector<18x128xf32>
    %168 = arith.mulf %167, %143 : vector<18x128xf32>
    %169 = arith.addf %166, %168 : vector<18x128xf32>
    %170 = vector.extract_strided_slice %151 {offsets = [0, 0], sizes = [16, 128], strides = [1, 1]} : vector<18x128xf32> to vector<16x128xf32>
    %171 = vector.extract_strided_slice %161 {offsets = [1, 0], sizes = [16, 128], strides = [1, 1]} : vector<18x128xf32> to vector<16x128xf32>
    %172 = arith.addf %170, %171 : vector<16x128xf32>
    %173 = vector.extract_strided_slice %169 {offsets = [2, 0], sizes = [16, 128], strides = [1, 1]} : vector<18x128xf32> to vector<16x128xf32>
    %174 = arith.addf %172, %173 : vector<16x128xf32>
    %c3_46 = arith.constant 3 : index
    %c0_47 = arith.constant 0 : index
    %c0_48 = arith.constant 0 : index
    %175 = vector.load %arg7[%c3_46, %c0_47, %c0_48] : memref<8x16x128xf32, #tpu.memory_space<vmem>>, vector<1x16x128xf32>
    %176 = vector.shape_cast %175 : vector<1x16x128xf32> to vector<16x128xf32>
    %177 = vector.shape_cast %174 : vector<16x128xf32> to vector<1x16x128xf32>
    tpu.vector_store %arg7[%c3_46, %c0_47, %c0_48], %177 {strides = array<i32>} : memref<8x16x128xf32, #tpu.memory_space<vmem>>, vector<1x16x128xf32>,
    %c3_49 = arith.constant 3 : index
    %c0_50 = arith.constant 0 : index
    %c0_51 = arith.constant 0 : index
    %178 = vector.load %arg4[%c3_49, %c0_50, %c0_51] : memref<8x18x128xf32, #tpu.memory_space<vmem>>, vector<1x18x128xf32>
    %179 = vector.shape_cast %178 : vector<1x18x128xf32> to vector<18x128xf32>
    %c4_52 = arith.constant 4 : index
    %c0_53 = arith.constant 0 : index
    %c0_54 = arith.constant 0 : index
    %180 = vector.load %arg4[%c4_52, %c0_53, %c0_54] : memref<8x18x128xf32, #tpu.memory_space<vmem>>, vector<1x18x128xf32>
    %181 = vector.shape_cast %180 : vector<1x18x128xf32> to vector<18x128xf32>
    %c5_55 = arith.constant 5 : index
    %c0_56 = arith.constant 0 : index
    %c0_57 = arith.constant 0 : index
    %182 = vector.load %arg4[%c5_55, %c0_56, %c0_57] : memref<8x18x128xf32, #tpu.memory_space<vmem>>, vector<1x18x128xf32>
    %183 = vector.shape_cast %182 : vector<1x18x128xf32> to vector<18x128xf32>
    %184 = vector.broadcast %6 : f32 to vector<18x128xf32>
    %185 = arith.mulf %184, %179 : vector<18x128xf32>
    %186 = vector.broadcast %9 : f32 to vector<18x128xf32>
    %187 = arith.mulf %186, %181 : vector<18x128xf32>
    %188 = arith.addf %185, %187 : vector<18x128xf32>
    %189 = vector.broadcast %12 : f32 to vector<18x128xf32>
    %190 = arith.mulf %189, %183 : vector<18x128xf32>
    %191 = arith.addf %188, %190 : vector<18x128xf32>
    %192 = vector.broadcast %7 : f32 to vector<18x128xf32>
    %193 = arith.mulf %192, %179 : vector<18x128xf32>
    %194 = vector.broadcast %10 : f32 to vector<18x128xf32>
    %195 = arith.mulf %194, %181 : vector<18x128xf32>
    %196 = arith.addf %193, %195 : vector<18x128xf32>
    %197 = vector.broadcast %13 : f32 to vector<18x128xf32>
    %198 = arith.mulf %197, %183 : vector<18x128xf32>
    %199 = arith.addf %196, %198 : vector<18x128xf32>
    %200 = vector.broadcast %15 : f32 to vector<18x128xf32>
    %201 = arith.addf %199, %200 : vector<18x128xf32>
    %202 = vector.broadcast %8 : f32 to vector<18x128xf32>
    %203 = arith.mulf %202, %179 : vector<18x128xf32>
    %204 = vector.broadcast %11 : f32 to vector<18x128xf32>
    %205 = arith.mulf %204, %181 : vector<18x128xf32>
    %206 = arith.addf %203, %205 : vector<18x128xf32>
    %207 = vector.broadcast %14 : f32 to vector<18x128xf32>
    %208 = arith.mulf %207, %183 : vector<18x128xf32>
    %209 = arith.addf %206, %208 : vector<18x128xf32>
    %210 = vector.extract_strided_slice %191 {offsets = [0, 0], sizes = [16, 128], strides = [1, 1]} : vector<18x128xf32> to vector<16x128xf32>
    %211 = vector.extract_strided_slice %201 {offsets = [1, 0], sizes = [16, 128], strides = [1, 1]} : vector<18x128xf32> to vector<16x128xf32>
    %212 = arith.addf %210, %211 : vector<16x128xf32>
    %213 = vector.extract_strided_slice %209 {offsets = [2, 0], sizes = [16, 128], strides = [1, 1]} : vector<18x128xf32> to vector<16x128xf32>
    %214 = arith.addf %212, %213 : vector<16x128xf32>
    %c4_58 = arith.constant 4 : index
    %c0_59 = arith.constant 0 : index
    %c0_60 = arith.constant 0 : index
    %215 = vector.load %arg7[%c4_58, %c0_59, %c0_60] : memref<8x16x128xf32, #tpu.memory_space<vmem>>, vector<1x16x128xf32>
    %216 = vector.shape_cast %215 : vector<1x16x128xf32> to vector<16x128xf32>
    %217 = vector.shape_cast %214 : vector<16x128xf32> to vector<1x16x128xf32>
    tpu.vector_store %arg7[%c4_58, %c0_59, %c0_60], %217 {strides = array<i32>} : memref<8x16x128xf32, #tpu.memory_space<vmem>>, vector<1x16x128xf32>,
    %c4_61 = arith.constant 4 : index
    %c0_62 = arith.constant 0 : index
    %c0_63 = arith.constant 0 : index
    %218 = vector.load %arg4[%c4_61, %c0_62, %c0_63] : memref<8x18x128xf32, #tpu.memory_space<vmem>>, vector<1x18x128xf32>
    %219 = vector.shape_cast %218 : vector<1x18x128xf32> to vector<18x128xf32>
    %c5_64 = arith.constant 5 : index
    %c0_65 = arith.constant 0 : index
    %c0_66 = arith.constant 0 : index
    %220 = vector.load %arg4[%c5_64, %c0_65, %c0_66] : memref<8x18x128xf32, #tpu.memory_space<vmem>>, vector<1x18x128xf32>
    %221 = vector.shape_cast %220 : vector<1x18x128xf32> to vector<18x128xf32>
    %c6_67 = arith.constant 6 : index
    %c0_68 = arith.constant 0 : index
    %c0_69 = arith.constant 0 : index
    %222 = vector.load %arg4[%c6_67, %c0_68, %c0_69] : memref<8x18x128xf32, #tpu.memory_space<vmem>>, vector<1x18x128xf32>
    %223 = vector.shape_cast %222 : vector<1x18x128xf32> to vector<18x128xf32>
    %224 = vector.broadcast %6 : f32 to vector<18x128xf32>
    %225 = arith.mulf %224, %219 : vector<18x128xf32>
    %226 = vector.broadcast %9 : f32 to vector<18x128xf32>
    %227 = arith.mulf %226, %221 : vector<18x128xf32>
    %228 = arith.addf %225, %227 : vector<18x128xf32>
    %229 = vector.broadcast %12 : f32 to vector<18x128xf32>
    %230 = arith.mulf %229, %223 : vector<18x128xf32>
    %231 = arith.addf %228, %230 : vector<18x128xf32>
    %232 = vector.broadcast %7 : f32 to vector<18x128xf32>
    %233 = arith.mulf %232, %219 : vector<18x128xf32>
    %234 = vector.broadcast %10 : f32 to vector<18x128xf32>
    %235 = arith.mulf %234, %221 : vector<18x128xf32>
    %236 = arith.addf %233, %235 : vector<18x128xf32>
    %237 = vector.broadcast %13 : f32 to vector<18x128xf32>
    %238 = arith.mulf %237, %223 : vector<18x128xf32>
    %239 = arith.addf %236, %238 : vector<18x128xf32>
    %240 = vector.broadcast %15 : f32 to vector<18x128xf32>
    %241 = arith.addf %239, %240 : vector<18x128xf32>
    %242 = vector.broadcast %8 : f32 to vector<18x128xf32>
    %243 = arith.mulf %242, %219 : vector<18x128xf32>
    %244 = vector.broadcast %11 : f32 to vector<18x128xf32>
    %245 = arith.mulf %244, %221 : vector<18x128xf32>
    %246 = arith.addf %243, %245 : vector<18x128xf32>
    %247 = vector.broadcast %14 : f32 to vector<18x128xf32>
    %248 = arith.mulf %247, %223 : vector<18x128xf32>
    %249 = arith.addf %246, %248 : vector<18x128xf32>
    %250 = vector.extract_strided_slice %231 {offsets = [0, 0], sizes = [16, 128], strides = [1, 1]} : vector<18x128xf32> to vector<16x128xf32>
    %251 = vector.extract_strided_slice %241 {offsets = [1, 0], sizes = [16, 128], strides = [1, 1]} : vector<18x128xf32> to vector<16x128xf32>
    %252 = arith.addf %250, %251 : vector<16x128xf32>
    %253 = vector.extract_strided_slice %249 {offsets = [2, 0], sizes = [16, 128], strides = [1, 1]} : vector<18x128xf32> to vector<16x128xf32>
    %254 = arith.addf %252, %253 : vector<16x128xf32>
    %c5_70 = arith.constant 5 : index
    %c0_71 = arith.constant 0 : index
    %c0_72 = arith.constant 0 : index
    %255 = vector.load %arg7[%c5_70, %c0_71, %c0_72] : memref<8x16x128xf32, #tpu.memory_space<vmem>>, vector<1x16x128xf32>
    %256 = vector.shape_cast %255 : vector<1x16x128xf32> to vector<16x128xf32>
    %257 = vector.shape_cast %254 : vector<16x128xf32> to vector<1x16x128xf32>
    tpu.vector_store %arg7[%c5_70, %c0_71, %c0_72], %257 {strides = array<i32>} : memref<8x16x128xf32, #tpu.memory_space<vmem>>, vector<1x16x128xf32>,
    %c5_73 = arith.constant 5 : index
    %c0_74 = arith.constant 0 : index
    %c0_75 = arith.constant 0 : index
    %258 = vector.load %arg4[%c5_73, %c0_74, %c0_75] : memref<8x18x128xf32, #tpu.memory_space<vmem>>, vector<1x18x128xf32>
    %259 = vector.shape_cast %258 : vector<1x18x128xf32> to vector<18x128xf32>
    %c6_76 = arith.constant 6 : index
    %c0_77 = arith.constant 0 : index
    %c0_78 = arith.constant 0 : index
    %260 = vector.load %arg4[%c6_76, %c0_77, %c0_78] : memref<8x18x128xf32, #tpu.memory_space<vmem>>, vector<1x18x128xf32>
    %261 = vector.shape_cast %260 : vector<1x18x128xf32> to vector<18x128xf32>
    %c7_79 = arith.constant 7 : index
    %c0_80 = arith.constant 0 : index
    %c0_81 = arith.constant 0 : index
    %262 = vector.load %arg4[%c7_79, %c0_80, %c0_81] : memref<8x18x128xf32, #tpu.memory_space<vmem>>, vector<1x18x128xf32>
    %263 = vector.shape_cast %262 : vector<1x18x128xf32> to vector<18x128xf32>
    %264 = vector.broadcast %6 : f32 to vector<18x128xf32>
    %265 = arith.mulf %264, %259 : vector<18x128xf32>
    %266 = vector.broadcast %9 : f32 to vector<18x128xf32>
    %267 = arith.mulf %266, %261 : vector<18x128xf32>
    %268 = arith.addf %265, %267 : vector<18x128xf32>
    %269 = vector.broadcast %12 : f32 to vector<18x128xf32>
    %270 = arith.mulf %269, %263 : vector<18x128xf32>
    %271 = arith.addf %268, %270 : vector<18x128xf32>
    %272 = vector.broadcast %7 : f32 to vector<18x128xf32>
    %273 = arith.mulf %272, %259 : vector<18x128xf32>
    %274 = vector.broadcast %10 : f32 to vector<18x128xf32>
    %275 = arith.mulf %274, %261 : vector<18x128xf32>
    %276 = arith.addf %273, %275 : vector<18x128xf32>
    %277 = vector.broadcast %13 : f32 to vector<18x128xf32>
    %278 = arith.mulf %277, %263 : vector<18x128xf32>
    %279 = arith.addf %276, %278 : vector<18x128xf32>
    %280 = vector.broadcast %15 : f32 to vector<18x128xf32>
    %281 = arith.addf %279, %280 : vector<18x128xf32>
    %282 = vector.broadcast %8 : f32 to vector<18x128xf32>
    %283 = arith.mulf %282, %259 : vector<18x128xf32>
    %284 = vector.broadcast %11 : f32 to vector<18x128xf32>
    %285 = arith.mulf %284, %261 : vector<18x128xf32>
    %286 = arith.addf %283, %285 : vector<18x128xf32>
    %287 = vector.broadcast %14 : f32 to vector<18x128xf32>
    %288 = arith.mulf %287, %263 : vector<18x128xf32>
    %289 = arith.addf %286, %288 : vector<18x128xf32>
    %290 = vector.extract_strided_slice %271 {offsets = [0, 0], sizes = [16, 128], strides = [1, 1]} : vector<18x128xf32> to vector<16x128xf32>
    %291 = vector.extract_strided_slice %281 {offsets = [1, 0], sizes = [16, 128], strides = [1, 1]} : vector<18x128xf32> to vector<16x128xf32>
    %292 = arith.addf %290, %291 : vector<16x128xf32>
    %293 = vector.extract_strided_slice %289 {offsets = [2, 0], sizes = [16, 128], strides = [1, 1]} : vector<18x128xf32> to vector<16x128xf32>
    %294 = arith.addf %292, %293 : vector<16x128xf32>
    %c6_82 = arith.constant 6 : index
    %c0_83 = arith.constant 0 : index
    %c0_84 = arith.constant 0 : index
    %295 = vector.load %arg7[%c6_82, %c0_83, %c0_84] : memref<8x16x128xf32, #tpu.memory_space<vmem>>, vector<1x16x128xf32>
    %296 = vector.shape_cast %295 : vector<1x16x128xf32> to vector<16x128xf32>
    %297 = vector.shape_cast %294 : vector<16x128xf32> to vector<1x16x128xf32>
    tpu.vector_store %arg7[%c6_82, %c0_83, %c0_84], %297 {strides = array<i32>} : memref<8x16x128xf32, #tpu.memory_space<vmem>>, vector<1x16x128xf32>,
    %c6_85 = arith.constant 6 : index
    %c0_86 = arith.constant 0 : index
    %c0_87 = arith.constant 0 : index
    %298 = vector.load %arg4[%c6_85, %c0_86, %c0_87] : memref<8x18x128xf32, #tpu.memory_space<vmem>>, vector<1x18x128xf32>
    %299 = vector.shape_cast %298 : vector<1x18x128xf32> to vector<18x128xf32>
    %c7_88 = arith.constant 7 : index
    %c0_89 = arith.constant 0 : index
    %c0_90 = arith.constant 0 : index
    %300 = vector.load %arg4[%c7_88, %c0_89, %c0_90] : memref<8x18x128xf32, #tpu.memory_space<vmem>>, vector<1x18x128xf32>
    %301 = vector.shape_cast %300 : vector<1x18x128xf32> to vector<18x128xf32>
    %c0_91 = arith.constant 0 : index
    %c0_92 = arith.constant 0 : index
    %c0_93 = arith.constant 0 : index
    %302 = vector.load %arg6[%c0_91, %c0_92, %c0_93] : memref<1x18x128xf32, #tpu.memory_space<vmem>>, vector<1x18x128xf32>
    %303 = vector.shape_cast %302 : vector<1x18x128xf32> to vector<18x128xf32>
    %304 = vector.broadcast %5 : f32 to vector<18x128xf32>
    %305 = arith.mulf %303, %304 : vector<18x128xf32>
    %306 = vector.broadcast %6 : f32 to vector<18x128xf32>
    %307 = arith.mulf %306, %299 : vector<18x128xf32>
    %308 = vector.broadcast %9 : f32 to vector<18x128xf32>
    %309 = arith.mulf %308, %301 : vector<18x128xf32>
    %310 = arith.addf %307, %309 : vector<18x128xf32>
    %311 = vector.broadcast %12 : f32 to vector<18x128xf32>
    %312 = arith.mulf %311, %305 : vector<18x128xf32>
    %313 = arith.addf %310, %312 : vector<18x128xf32>
    %314 = vector.broadcast %7 : f32 to vector<18x128xf32>
    %315 = arith.mulf %314, %299 : vector<18x128xf32>
    %316 = vector.broadcast %10 : f32 to vector<18x128xf32>
    %317 = arith.mulf %316, %301 : vector<18x128xf32>
    %318 = arith.addf %315, %317 : vector<18x128xf32>
    %319 = vector.broadcast %13 : f32 to vector<18x128xf32>
    %320 = arith.mulf %319, %305 : vector<18x128xf32>
    %321 = arith.addf %318, %320 : vector<18x128xf32>
    %322 = vector.broadcast %15 : f32 to vector<18x128xf32>
    %323 = arith.addf %321, %322 : vector<18x128xf32>
    %324 = vector.broadcast %8 : f32 to vector<18x128xf32>
    %325 = arith.mulf %324, %299 : vector<18x128xf32>
    %326 = vector.broadcast %11 : f32 to vector<18x128xf32>
    %327 = arith.mulf %326, %301 : vector<18x128xf32>
    %328 = arith.addf %325, %327 : vector<18x128xf32>
    %329 = vector.broadcast %14 : f32 to vector<18x128xf32>
    %330 = arith.mulf %329, %305 : vector<18x128xf32>
    %331 = arith.addf %328, %330 : vector<18x128xf32>
    %332 = vector.extract_strided_slice %313 {offsets = [0, 0], sizes = [16, 128], strides = [1, 1]} : vector<18x128xf32> to vector<16x128xf32>
    %333 = vector.extract_strided_slice %323 {offsets = [1, 0], sizes = [16, 128], strides = [1, 1]} : vector<18x128xf32> to vector<16x128xf32>
    %334 = arith.addf %332, %333 : vector<16x128xf32>
    %335 = vector.extract_strided_slice %331 {offsets = [2, 0], sizes = [16, 128], strides = [1, 1]} : vector<18x128xf32> to vector<16x128xf32>
    %336 = arith.addf %334, %335 : vector<16x128xf32>
    %c7_94 = arith.constant 7 : index
    %c0_95 = arith.constant 0 : index
    %c0_96 = arith.constant 0 : index
    %337 = vector.load %arg7[%c7_94, %c0_95, %c0_96] : memref<8x16x128xf32, #tpu.memory_space<vmem>>, vector<1x16x128xf32>
    %338 = vector.shape_cast %337 : vector<1x16x128xf32> to vector<16x128xf32>
    %339 = vector.shape_cast %336 : vector<16x128xf32> to vector<1x16x128xf32>
    tpu.vector_store %arg7[%c7_94, %c0_95, %c0_96], %339 {strides = array<i32>} : memref<8x16x128xf32, #tpu.memory_space<vmem>>, vector<1x16x128xf32>,
    return
  }
  func.func @transform_0(%arg0: i32, %arg1: i32) -> i32 {
    %c0_i32 = arith.constant 0 : i32
    %c0_i32_0 = arith.constant 0 : i32
    return %c0_i32 : i32
  }
  func.func @transform_1(%arg0: i32, %arg1: i32) -> i32 {
    %c0_i32 = arith.constant 0 : i32
    %c0_i32_0 = arith.constant 0 : i32
    return %c0_i32 : i32
  }
  func.func @transform_2(%arg0: i32, %arg1: i32) -> (i32, i32, i32) {
    %c0_i32 = arith.constant 0 : i32
    %c0_i32_0 = arith.constant 0 : i32
    return %arg1, %c0_i32, %arg0 : i32, i32, i32
  }
  func.func @transform_3(%arg0: i32, %arg1: i32) -> (i32, i32, i32) {
    %c8_i32 = arith.constant 8 : i32
    %0 = arith.muli %arg1, %c8_i32 : i32
    %c1_i32 = arith.constant 1 : i32
    %1 = arith.subi %0, %c1_i32 : i32
    %c0_i32 = arith.constant 0 : i32
    %2 = arith.maxsi %1, %c0_i32 : i32
    %c0_i32_0 = arith.constant 0 : i32
    %c0_i32_1 = arith.constant 0 : i32
    return %2, %c0_i32_0, %arg0 : i32, i32, i32
  }
  func.func @transform_4(%arg0: i32, %arg1: i32) -> (i32, i32, i32) {
    %c1_i32 = arith.constant 1 : i32
    %0 = arith.addi %arg1, %c1_i32 : i32
    %c8_i32 = arith.constant 8 : i32
    %1 = arith.muli %0, %c8_i32 : i32
    %c15_i32 = arith.constant 15 : i32
    %2 = arith.minsi %1, %c15_i32 : i32
    %c0_i32 = arith.constant 0 : i32
    %c0_i32_0 = arith.constant 0 : i32
    return %2, %c0_i32, %arg0 : i32, i32, i32
  }
  func.func @transform_5(%arg0: i32, %arg1: i32) -> (i32, i32, i32) {
    %c0_i32 = arith.constant 0 : i32
    %c0_i32_0 = arith.constant 0 : i32
    return %arg1, %c0_i32, %arg0 : i32, i32, i32
  }
}

</mosaic_0001>

<bundles_post_ra>
// kernel: depthwise_conv_forward.1
= control target key start
LH: loop header
LB: loop body
LE: loop exit
PB: predicated region body
PF: predicated region fallthrough
CT: control target
= control target key end

     0   :  { %s2072_s0 = inlined_call_operand.vmem [shape: f32[9], index: 0, kind: input, shape index: {}]   ;;  %s2073_s1 = inlined_call_operand.<no memory space> [shape: f32[1], index: 1, kind: input, shape index: {}]   ;;  %s2074_s2 = inlined_call_operand.vmem [shape: f32[16,18,128], index: 2, kind: input, shape index: {}, may-alias: {2,3,4}]   ;;  %s2075_s3 = inlined_call_operand.vmem [shape: f32[16,18,128], index: 3, kind: input, shape index: {}, may-alias: {2,3,4}]   ;;  %s2076_s4 = inlined_call_operand.vmem [shape: f32[16,18,128], index: 4, kind: input, shape index: {}, may-alias: {2,3,4}]   ;;  %s2077_s5 = inlined_call_operand.vmem [shape: f32[16,16,128], index: 5, kind: output, shape index: {}]  }
   0x1   :  { %10 = sst [smem:[#allocation2]] %s2073_s1 }
   0x2   :  { %11 = vsyncpa [#allocation4], 0  ;;  %s1445_s20 = smov 0   ;;  %s1447_s21 = smov 0  }
   0x3   :  { %s1449_s22 = smov 0  }
   0x4 LB: > { %s1206_s1 = sadd.s32 4294967295, %s1409_s22   ;;  %s26_s23 = sadd.s32 1, %s1405_s21  ;;  %s1409_s22 = sphi %s1449_s22, %s17_s22   ;;  %s1405_s21 = sphi %s1447_s21, %s2082_s21   ;;  %s1401_s20 = sphi %s1445_s20, %s2081_s20  }
   0x5   : > { %p27_p0 = scmp.ge.s32.totalorder %s26_s23, 2  ;;  %p1214_p1 = scmp.ge.s32.totalorder %s1409_s22, 1 }
   0x6   : > { %p204_p2 = scmp.lt.s32.totalorder %s1409_s22, 3  ;;  %p1470_p4 = scmp.eq.s32.totalorder %s1206_s1, 0 }
   0x7   : > { %s2084_s23 = smov (%p27_p0, %s26_s23), 0  ;;  %s217_s28 = sshll.u32 %s2072_s0, 4  ;;  %s218_s28 = int_to_ptr.vmem [resolvable:$true] %s217_s28 }
   0x8   : > { %p1466_p3 = pnand %p1214_p1, %p204_p2  ;;  %s1368_s29 = scalar_lea.vmem %s218_s28, 16 }
   0x9   : > { %p1369_p7 = scmp.ne.s32.totalorder %s218_s28, %s1368_s29  ;;  %p1376_p11 = scmp.lt.s32.totalorder %s218_s28, %s218_s28 }
   0xa   : > { %p1337_p5 = pneg %p1466_p3  ;;  %p1377_p12 = scmp.lt.s32.totalorder %s1368_s29, %s1368_s29 }
   0xc   : > { %p1338_p6 = pnand %p1470_p4, %p1337_p5  ;;  %p1378_p13 = por %p1377_p12, %p1376_p11 }
   0xe   : > { %p1370_p8 = pneg %p1338_p6 }
  0x10   : > { %p1371_p9 = pnand %p1370_p8, %p1369_p7 }
  0x12   : > { %p1372_p10 = pneg %p1371_p9 }
  0x14   : > { %p1379_p0 = pnand %p1378_p13, %p1372_p10 }
  0x16   : > { %1382 = shalt.err (!%p1379_p0)
}
  0x17   : > { %s1411_s30 = smov [#allocation3]   ;;  %284 = sbr.rel (%p1466_p3) target bundleno = 173 (0xad), region = 40 }
  0x18   : > { %1340 = dma.vmem_to_smem (!%p1338_p6), %s218_s28, 16, %s1411_s30, [#allocation4]  }
  0x1e   : > { %1396 = dma.done.wait (%p1470_p4), [#allocation4], 16  }
  0x1f   : > { %1398 = vsyncadd (%p1470_p4), [#allocation4], 4294967280 }
  0x20   : > { %290 = sfence }
  0x21   : > { %s1488_s6 = sshll.u32 %s1401_s20, 3  ;;  %p397_p3 = scmp.gt.s32.totalorder %s1401_s20, 0  ;;  %vm483_vm0 = vcmask 1046528   ;;  %vm496_vm1 = vcmask 1045504  }
  0x22   : > { %p346_p1 = scmp.lt.s32.totalorder %s1488_s6, 15  ;;  %s1222_s7 = sadd.s32 4294967295, %s1488_s6 }
  0x23   : > { %p357_p2 = scmp.gt.s32.totalorder %s1222_s7, 0  ;;  %p1223_p5 = scmp.lt.s32.totalorder %s1222_s7, 15 }
  0x24   : > { %s1493_s8 = scalar_select %p346_p1, %s1488_s6, 15 }
  0x25   : > { %s2086_s7 = smov (!%p357_p2, %s1222_s7), 0  ;;  %s403_s14 = sld [smem:[#allocation3]] }
  0x26   : > { %s1330_s9 = smul.u32 24, %s1493_s8  ;;  %s2088_s7 = smov (!%p1223_p5, %s2086_s7), 15 }
  0x27   : > { %s1331_s13 = smul.u32 24, %s2088_s7  ;;  %s1237_s19 = sld [smem:[#allocation3 + $0x1]] }
  0x28   : > { %s1500_s12 = scalar_lea.vmem %s2074_s2, %s1330_s9  ;;  %s1505_s24 = sld [smem:[#allocation3 + $0x2]] }
  0x29   : > { %s398_s15 = scalar_select %p397_p3, 1, 0  ;;  %v1512_v4 = vld [vmem:[%s1500_s12] sm:$0xff]  ;;  %v1515_v5 = vld [vmem:[%s1500_s12 + $0x8] sm:$0xff]  ;;  %v1522_v8 = vld [vmem:[%s1500_s12 + $0x18] sm:$0xff] }
  0x2a   : > { %s366_s18 = scalar_lea.vmem %s2075_s3, %s1331_s13  ;;  %s1239_s25 = sld [smem:[#allocation3 + $0x3]]  ;;  %v1525_v9 = vld [vmem:[%s1500_s12 + $0x20] sm:$0xff]  ;;  %v1532_v12 = vld [vmem:[%s1500_s12 + $0x30] sm:$0xff]  ;;  %v1247_v46 = vld [vmem:[%s1500_s12 + $0x28] sm:$0x3] }
  0x2b   : > { %s399_s1 = scvt.s32.f32 %s398_s15  ;;  %v413_v0 = vld [vmem:[%s366_s18] sm:$0xff]  ;;  %v414_v1 = vld [vmem:[%s366_s18 + $0x8] sm:$0xff]  ;;  %v415_v2 = vld [vmem:[%s366_s18 + $0x10] sm:$0x3]  ;;  %s1240_s26 = sld [smem:[#allocation3 + $0x4]]  ;;  %v1527_v10 = vstv %s403_s14 }
  0x2c   : > { %s1507_s27 = sld [smem:[#allocation3 + $0x5]]  ;;  %s1509_s28 = sld [smem:[#allocation3 + $0x6]]  ;;  %v1536_v13 = vmul.f32 %v1527_v10, %v1512_v4  ;;  %v1540_v14 = vmul.f32 %v1527_v10, %v1515_v5  ;;  %v1544_v15 = vmul.f32 %v1522_v8, %v1527_v10  ;;  %v1548_v16 = vmul.f32 %v1525_v9, %v1527_v10  ;;  %v422_v45 = vld [vmem:[%s1500_s12 + $0x10] sm:$0x3] }
  0x2d   : > { %v416_v3 = vstv %s399_s1  ;;  %s1517_s29 = sld [smem:[#allocation3 + $0x7]]  ;;  %s1519_s30 = sld [smem:[#allocation3 + $0x8]]  ;;  %v1551_v18 = vstv %s1237_s19  ;;  %v1556_v20 = vmul.f32 %v1532_v12, %v1527_v10 }
  0x2e   : > { %v417_v6 = vmul.f32 %v416_v3, %v413_v0  ;;  %v418_v7 = vmul.f32 %v416_v3, %v414_v1  ;;  %v419_v11 = vmul.f32 %v416_v3, %v415_v2  ;;  %s1529_s7 = sld [smem:[#allocation2]]  ;;  %v1561_v23 = vstv %s1505_s24  ;;  %s1329_s9 = sshll.u32 %s1493_s8, 4 }
  0x2f   : > { %s1632_s11 = scalar_lea.vmem %s2077_s5, %s1329_s9  ;;  %s1328_s13 = sadd.s32 8, %s1488_s6 }
  0x30   : > { %v428_v17 = vmul.f32 %v1527_v10, %v417_v6  ;;  %v429_v19 = vmul.f32 %v1527_v10, %v418_v7  ;;  %v441_v21 = vmul.f32 %v1551_v18, %v417_v6  ;;  %v442_v22 = vmul.f32 %v1551_v18, %v418_v7  ;;  %p1901_p4 = scmp.lt.s32.totalorder %s1328_s13, 15  ;;  %p400_p6 = scmp.lt.s32.totalorder %s1401_s20, 1 }
  0x31   : > { %v443_v24 = vmul.f32 %v1551_v18, %v419_v11  ;;  %v1564_v25 = vstv %s1239_s25  ;;  %v1566_v26 = vstv %s1240_s26  ;;  %v463_v27 = vmul.f32 %v1561_v23, %v417_v6 }
  0x32   : > { %v464_v28 = vmul.f32 %v1561_v23, %v418_v7  ;;  %v431_v29 = vmul.f32 %v1564_v25, %v1512_v4  ;;  %v1573_v30 = vstv %s1509_s28  ;;  %v445_v31 = vmul.f32 %v1566_v26, %v1512_v4  ;;  %s2090_s13 = smov (!%p1901_p4, %s1328_s13), 15 }
  0x33   : > { %v446_v32 = vmul.f32 %v1566_v26, %v1515_v5  ;;  %v436_v33 = vmul.f32 %v1522_v8, %v1573_v30  ;;  %v1582_v34 = vstv %s1517_s29  ;;  %v1585_v35 = vstv %s1507_s27  ;;  %s2092_s13 = smov (!%p1901_p4, %s2090_s13), 15 }
  0x34   : > { %v1588_v36 = vstv %s1519_s30  ;;  %v433_v37 = vadd.f32 %v431_v29, %v428_v17  ;;  %v448_v38 = vadd.f32 %v445_v31, %v441_v21  ;;  %v452_v40 = vmul.f32 %v1522_v8, %v1582_v34  ;;  %s1332_s6 = smul.u32 24, %s2092_s13 }
  0x35   : > { %v449_v39 = vadd.f32 %v446_v32, %v442_v22  ;;  %v453_v41 = vmul.f32 %v1525_v9, %v1582_v34  ;;  %v1595_v42 = vstv %s1529_s7  ;;  %v467_v43 = vmul.f32 %v1585_v35, %v1512_v4  ;;  %s1977_s15 = scalar_select %p400_p6, 1, 0 }
  0x36   : > { %v468_v44 = vmul.f32 %v1585_v35, %v1515_v5  ;;  %v438_v47 = vadd.f32 %v436_v33, %v433_v37  ;;  %v455_v48 = vadd.f32 %v452_v40, %v448_v38  ;;  %v474_v49 = vmul.f32 %v1522_v8, %v1588_v36  ;;  %s1996_s17 = scalar_lea.vmem %s2076_s4, %s1332_s6 }
  0x37   : > { %v475_v50 = vmul.f32 %v1525_v9, %v1588_v36  ;;  %v456_v51 = vadd.f32 %v453_v41, %v449_v39  ;;  %v470_v52 = vadd.f32 %v467_v43, %v463_v27  ;;  %v432_v54 = vmul.f32 %v1564_v25, %v1515_v5  ;;  %s402_s18 = scvt.s32.f32 %s1977_s15 }
  0x38   : > { %v471_v53 = vadd.f32 %v468_v44, %v464_v28  ;;  %v459_v55 = vadd.f32 %v1595_v42, %v455_v48  ;;  %v437_v56 = vmul.f32 %v1525_v9, %v1573_v30  ;;  %v447_v57 = vmul.f32 %v1566_v26, %v422_v45 }
  0x39   : > { %v454_v58 = vmul.f32 %v1247_v46, %v1582_v34  ;;  %v460_v59 = vadd.f32 %v1595_v42, %v456_v51  ;;  %v477_v60 = vadd.f32 %v474_v49, %v470_v52  ;;  %v434_v62 = vadd.f32 %v432_v54, %v429_v19 }
  0x3a   : > { %v478_v61 = vadd.f32 %v475_v50, %v471_v53  ;;  %v484_v63 = vrot.slane %v459_v55, 1  ;;  %v450_v0 = vadd.f32 %v447_v57, %v443_v24  ;;  %v465_v1 = vmul.f32 %v1561_v23, %v419_v11 }
  0x3b   : > { %v469_v2 = vmul.f32 %v1585_v35, %v422_v45  ;;  %v485_v3 = vrot.slane %v460_v59, 1  ;;  %v497_v6 = vrot.slane %v477_v60, 2  ;;  %v439_v17 = vadd.f32 %v437_v56, %v434_v62  ;;  %v1643_v45 = vld [vmem:[%s1500_s12 + $0x38] sm:$0xff] }
  0x3c   : > { %v498_v7 = vrot.slane %v478_v61, 2  ;;  %v457_v21 = vadd.f32 %v454_v58, %v450_v0  ;;  %v476_v27 = vmul.f32 %v1247_v46, %v1588_v36  ;;  %v520_v28 = vmul.f32 %v1522_v8, %v1564_v25 }
  0x3d   : > { %v472_v22 = vadd.f32 %v469_v2, %v465_v1  ;;  %v486_v19 = vsel %vm483_vm0, %v484_v63, %v485_v3  ;;  %v524_v11 = vmul.f32 %v1532_v12, %v1573_v30  ;;  %v528_v29 = vmul.f32 %v1551_v18, %v1512_v4 }
  0x3e   : > { %v499_v24 = vsel %vm496_vm1, %v497_v6, %v498_v7  ;;  %v491_v31 = vadd.f32 %v486_v19, %v438_v47  ;;  %v461_v32 = vadd.f32 %v1595_v42, %v457_v21  ;;  %v522_v37 = vadd.f32 %v520_v28, %v1536_v13 }
  0x3f   : > { %v479_v33 = vadd.f32 %v476_v27, %v472_v22  ;;  %v529_v38 = vmul.f32 %v1551_v18, %v1515_v5  ;;  %v531_v39 = vmul.f32 %v1522_v8, %v1566_v26  ;;  %v532_v40 = vmul.f32 %v1525_v9, %v1566_v26 }
  0x40   : > { %v537_v41 = vmul.f32 %v1532_v12, %v1582_v34  ;;  %v504_v43 = vadd.f32 %v499_v24, %v491_v31  ;;  %v487_v13 = vrot.slane %v461_v32, 1  ;;  %v526_v46 = vadd.f32 %v524_v11, %v522_v37 }
  0x41   : > { %v500_v44 = vrot.slane %v479_v33, 2  ;;  %v534_v47 = vadd.f32 %v531_v39, %v528_v29  ;;  %v535_v48 = vadd.f32 %v532_v40, %v529_v38  ;;  %v538_v49 = vmul.f32 %v1643_v45, %v1582_v34  ;;  %v1680_v38 = vld [vmem:[%s1500_s12 + $0x48] sm:$0xff] }
  0x42   : > { %v546_v50 = vmul.f32 %v1561_v23, %v1512_v4  ;;  %506 = vst [vmem:[%s1632_s11] sm:$0xff] %v504_v43  ;;  %v488_v51 = vsel %vm483_vm0, %v485_v3, %v487_v13  ;;  %v547_v53 = vmul.f32 %v1561_v23, %v1515_v5  ;;  %v549_v54 = vmul.f32 %v1522_v8, %v1585_v35  ;;  %v510_v4 = vld [vmem:[%s1500_s12 + $0x10] sm:$0x3]  ;;  %v1250_v5 = vld [vmem:[%s1500_s12 + $0x28] sm:$0x3]  ;;  %v1253_v3 = vld [vmem:[%s1500_s12 + $0x40] sm:$0x3] }
  0x43   : > { %v501_v52 = vsel %vm496_vm1, %v498_v7, %v500_v44  ;;  %v492_v55 = vadd.f32 %v488_v51, %v439_v17  ;;  %v540_v56 = vadd.f32 %v537_v41, %v534_v47  ;;  %v541_v57 = vadd.f32 %v538_v49, %v535_v48 }
  0x44   : > { %v550_v58 = vmul.f32 %v1525_v9, %v1585_v35  ;;  %v552_v59 = vadd.f32 %v549_v54, %v546_v50  ;;  %v555_v60 = vmul.f32 %v1532_v12, %v1588_v36  ;;  %v556_v61 = vmul.f32 %v1643_v45, %v1588_v36  ;;  %v1697_v54 = vld [vmem:[%s1500_s12 + $0x50] sm:$0xff] }
  0x45   : > { %v521_v62 = vmul.f32 %v1525_v9, %v1564_v25  ;;  %v505_v63 = vadd.f32 %v501_v52, %v492_v55  ;;  %v543_v0 = vadd.f32 %v540_v56, %v1595_v42  ;;  %v544_v1 = vadd.f32 %v541_v57, %v1595_v42 }
  0x46   : > { %v553_v2 = vadd.f32 %v550_v58, %v547_v53  ;;  %v558_v6 = vadd.f32 %v555_v60, %v552_v59  ;;  %v525_v17 = vmul.f32 %v1643_v45, %v1573_v30  ;;  %v530_v21 = vmul.f32 %v510_v4, %v1551_v18 }
  0x47   : > { %v523_v7 = vadd.f32 %v521_v62, %v1540_v14  ;;  %507 = vst [vmem:[%s1632_s11 + $0x8] sm:$0xff] %v505_v63  ;;  %v564_v27 = vrot.slane %v543_v0, 1  ;;  %v565_v28 = vrot.slane %v544_v1, 1  ;;  %v533_v19 = vmul.f32 %v1250_v5, %v1566_v26 }
  0x48   : > { %v559_v22 = vadd.f32 %v556_v61, %v553_v2  ;;  %v576_v24 = vrot.slane %v558_v6, 2  ;;  %v539_v29 = vmul.f32 %v1253_v3, %v1582_v34  ;;  %v548_v31 = vmul.f32 %v510_v4, %v1561_v23  ;;  %v1258_v2 = vld [vmem:[%s1500_s12 + $0x28] sm:$0x3] }
  0x49   : > { %v527_v11 = vadd.f32 %v525_v17, %v523_v7  ;;  %v566_v14 = vsel %vm483_vm0, %v564_v27, %v565_v28  ;;  %v536_v33 = vadd.f32 %v533_v19, %v530_v21  ;;  %v551_v37 = vmul.f32 %v1250_v5, %v1585_v35  ;;  %v1261_v27 = vld [vmem:[%s1500_s12 + $0x40] sm:$0x3]  ;;  %v1264_v19 = vld [vmem:[%s1500_s12 + $0x58] sm:$0x3] }
  0x4a   : > { %v577_v32 = vrot.slane %v559_v22, 2  ;;  %v571_v39 = vadd.f32 %v566_v14, %v526_v46  ;;  %v557_v40 = vmul.f32 %v1253_v3, %v1588_v36  ;;  %v600_v41 = vmul.f32 %v1532_v12, %v1564_v25 }
  0x4b   : > { %v604_v43 = vmul.f32 %v1680_v38, %v1573_v30  ;;  %v542_v44 = vadd.f32 %v539_v29, %v536_v33  ;;  %v554_v47 = vadd.f32 %v551_v37, %v548_v31  ;;  %v608_v48 = vmul.f32 %v1522_v8, %v1551_v18 }
  0x4c   : > { %v578_v13 = vsel %vm496_vm1, %v576_v24, %v577_v32  ;;  %v602_v50 = vadd.f32 %v600_v41, %v1544_v15  ;;  %v609_v46 = vmul.f32 %v1525_v9, %v1551_v18  ;;  %v611_v51 = vmul.f32 %v1532_v12, %v1566_v26 }
  0x4d   : > { %v583_v49 = vadd.f32 %v578_v13, %v571_v39  ;;  %v545_v52 = vadd.f32 %v542_v44, %v1595_v42  ;;  %v560_v53 = vadd.f32 %v557_v40, %v554_v47  ;;  %v612_v55 = vmul.f32 %v1643_v45, %v1566_v26 }
  0x4e   : > { %v617_v56 = vmul.f32 %v1680_v38, %v1582_v34  ;;  %v606_v15 = vadd.f32 %v604_v43, %v602_v50  ;;  %v614_v57 = vadd.f32 %v611_v51, %v608_v48  ;;  %v618_v58 = vmul.f32 %v1697_v54, %v1582_v34 }
  0x4f   : > { %1254 = vst [vmem:[%s1632_s11 + $0x10] sm:$0xff] %v583_v49  ;;  %v626_v4 = vmul.f32 %v1522_v8, %v1561_v23  ;;  %v567_v59 = vrot.slane %v545_v52, 1  ;;  %v579_v60 = vrot.slane %v560_v53, 2  ;;  %v615_v61 = vadd.f32 %v612_v55, %v609_v46  ;;  %v1740_v53 = vld [vmem:[%s1500_s12 + $0x60] sm:$0xff] }
  0x50   : > { %v627_v5 = vmul.f32 %v1525_v9, %v1561_v23  ;;  %v620_v62 = vadd.f32 %v617_v56, %v614_v57  ;;  %v629_v63 = vmul.f32 %v1532_v12, %v1585_v35  ;;  %v630_v0 = vmul.f32 %v1643_v45, %v1585_v35 }
  0x51   : > { %v635_v1 = vmul.f32 %v1680_v38, %v1588_v36  ;;  %v568_v8 = vsel %vm483_vm0, %v565_v28, %v567_v59  ;;  %v580_v3 = vsel %vm496_vm1, %v577_v32, %v579_v60  ;;  %v621_v6 = vadd.f32 %v618_v58, %v615_v61  ;;  %v1751_v60 = vld [vmem:[%s1500_s12 + $0x68] sm:$0xff] }
  0x52   : > { %v636_v7 = vmul.f32 %v1697_v54, %v1588_v36  ;;  %v572_v9 = vadd.f32 %v568_v8, %v527_v11  ;;  %v623_v17 = vadd.f32 %v620_v62, %v1595_v42  ;;  %v632_v21 = vadd.f32 %v629_v63, %v626_v4 }
  0x53   : > { %v633_v22 = vadd.f32 %v630_v0, %v627_v5  ;;  %v624_v24 = vadd.f32 %v621_v6, %v1595_v42  ;;  %v601_v29 = vmul.f32 %v1643_v45, %v1564_v25  ;;  %v605_v28 = vmul.f32 %v1697_v54, %v1573_v30 }
  0x54   : > { %v610_v31 = vmul.f32 %v1258_v2, %v1551_v18  ;;  %v584_v14 = vadd.f32 %v580_v3, %v572_v9  ;;  %v638_v32 = vadd.f32 %v635_v1, %v632_v21  ;;  %v644_v33 = vrot.slane %v623_v17, 1 }
  0x55   : > { %v639_v11 = vadd.f32 %v636_v7, %v633_v22  ;;  %v645_v37 = vrot.slane %v624_v24, 1  ;;  %v603_v39 = vadd.f32 %v601_v29, %v1548_v16  ;;  %v613_v40 = vmul.f32 %v1261_v27, %v1566_v26 }
  0x56   : > { %v619_v41 = vmul.f32 %v1264_v19, %v1582_v34  ;;  %1255 = vst [vmem:[%s1632_s11 + $0x18] sm:$0xff] %v584_v14  ;;  %v656_v43 = vrot.slane %v638_v32, 2  ;;  %v628_v44 = vmul.f32 %v1258_v2, %v1561_v23  ;;  %v631_v47 = vmul.f32 %v1261_v27, %v1585_v35 }
  0x57   : > { %v657_v13 = vrot.slane %v639_v11, 2  ;;  %v646_v48 = vsel %vm483_vm0, %v644_v33, %v645_v37  ;;  %v607_v49 = vadd.f32 %v605_v28, %v603_v39  ;;  %v616_v50 = vadd.f32 %v613_v40, %v610_v31  ;;  %v1269_v31 = vld [vmem:[%s1500_s12 + $0x40] sm:$0x3]  ;;  %v1272_v33 = vld [vmem:[%s1500_s12 + $0x58] sm:$0x3] }
  0x58   : > { %v637_v46 = vmul.f32 %v1264_v19, %v1588_v36  ;;  %v651_v51 = vadd.f32 %v646_v48, %v606_v15  ;;  %v634_v52 = vadd.f32 %v631_v47, %v628_v44  ;;  %v680_v55 = vmul.f32 %v1680_v38, %v1564_v25 }
  0x59   : > { %v658_v16 = vsel %vm496_vm1, %v656_v43, %v657_v13  ;;  %v622_v56 = vadd.f32 %v619_v41, %v616_v50  ;;  %v684_v57 = vmul.f32 %v1740_v53, %v1573_v30  ;;  %v688_v58 = vmul.f32 %v1532_v12, %v1551_v18  ;;  %v1275_v43 = vld [vmem:[%s1500_s12 + $0x70] sm:$0x3] }
  0x5a   : > { %v689_v4 = vmul.f32 %v1643_v45, %v1551_v18  ;;  %v663_v15 = vadd.f32 %v658_v16, %v651_v51  ;;  %v640_v59 = vadd.f32 %v637_v46, %v634_v52  ;;  %v682_v61 = vadd.f32 %v680_v55, %v1556_v20 }
  0x5b   : > { %v691_v5 = vmul.f32 %v1680_v38, %v1566_v26  ;;  %v625_v62 = vadd.f32 %v622_v56, %v1595_v42  ;;  %v692_v63 = vmul.f32 %v1697_v54, %v1566_v26  ;;  %v697_v0 = vmul.f32 %v1740_v53, %v1582_v34 }
  0x5c   : > { %v698_v1 = vmul.f32 %v1751_v60, %v1582_v34  ;;  %1265 = vst [vmem:[%s1632_s11 + $0x20] sm:$0xff] %v663_v15  ;;  %v659_v2 = vrot.slane %v640_v59, 2  ;;  %v686_v8 = vadd.f32 %v684_v57, %v682_v61  ;;  %v706_v20 = vmul.f32 %v1532_v12, %v1561_v23 }
  0x5d   : > { %v694_v3 = vadd.f32 %v691_v5, %v688_v58  ;;  %v647_v6 = vrot.slane %v625_v62, 1  ;;  %v695_v7 = vadd.f32 %v692_v63, %v689_v4  ;;  %v707_v9 = vmul.f32 %v1643_v45, %v1561_v23  ;;  %v1799_v62 = vld [vmem:[%s1500_s12 + $0x78] sm:$0xff] }
  0x5e   : > { %v709_v17 = vmul.f32 %v1680_v38, %v1585_v35  ;;  %v660_v21 = vsel %vm496_vm1, %v657_v13, %v659_v2  ;;  %v710_v27 = vmul.f32 %v1697_v54, %v1585_v35  ;;  %v715_v19 = vmul.f32 %v1740_v53, %v1588_v36 }
  0x5f   : > { %v700_v22 = vadd.f32 %v697_v0, %v694_v3  ;;  %v648_v12 = vsel %vm483_vm0, %v645_v37, %v647_v6  ;;  %v701_v24 = vadd.f32 %v698_v1, %v695_v7  ;;  %v716_v28 = vmul.f32 %v1751_v60, %v1588_v36 }
  0x60   : > { %v712_v29 = vadd.f32 %v709_v17, %v706_v20  ;;  %v652_v14 = vadd.f32 %v648_v12, %v607_v49  ;;  %v713_v11 = vadd.f32 %v710_v27, %v707_v9  ;;  %v679_v39 = vmul.f32 %v1643_v45, %v1527_v10  ;;  %v1815_v17 = vld [vmem:[%s1500_s12 + $0x80] sm:$0xff] }
  0x61   : > { %v703_v32 = vadd.f32 %v700_v22, %v1595_v42  ;;  %v704_v40 = vadd.f32 %v701_v24, %v1595_v42  ;;  %v681_v37 = vmul.f32 %v1697_v54, %v1564_v25  ;;  %v685_v13 = vmul.f32 %v1751_v60, %v1573_v30 }
  0x62   : > { %v718_v41 = vadd.f32 %v715_v19, %v712_v29  ;;  %v664_v44 = vadd.f32 %v660_v21, %v652_v14  ;;  %v719_v47 = vadd.f32 %v716_v28, %v713_v11  ;;  %v690_v49 = vmul.f32 %v1269_v31, %v1551_v18 }
  0x63   : > { %v724_v48 = vrot.slane %v703_v32, 1  ;;  %v725_v50 = vrot.slane %v704_v40, 1  ;;  %v683_v51 = vadd.f32 %v681_v37, %v679_v39  ;;  %v693_v45 = vmul.f32 %v1272_v33, %v1566_v26 }
  0x64   : > { %v736_v46 = vrot.slane %v718_v41, 2  ;;  %1266 = vst [vmem:[%s1632_s11 + $0x28] sm:$0xff] %v664_v44  ;;  %v737_v16 = vrot.slane %v719_v47, 2  ;;  %v699_v52 = vmul.f32 %v1275_v43, %v1582_v34  ;;  %v708_v55 = vmul.f32 %v1269_v31, %v1561_v23 }
  0x65   : > { %v711_v56 = vmul.f32 %v1272_v33, %v1585_v35  ;;  %v726_v57 = vsel %vm483_vm0, %v724_v48, %v725_v50  ;;  %v687_v58 = vadd.f32 %v685_v13, %v683_v51  ;;  %v696_v4 = vadd.f32 %v693_v45, %v690_v49  ;;  %v1280_v49 = vld [vmem:[%s1500_s12 + $0x58] sm:$0x3]  ;;  %v1286_v45 = vld [vmem:[%s1500_s12 + $0x88] sm:$0x3] }
  0x66   : > { %v717_v15 = vmul.f32 %v1275_v43, %v1588_v36  ;;  %v731_v59 = vadd.f32 %v726_v57, %v686_v8  ;;  %v738_v61 = vsel %vm496_vm1, %v736_v46, %v737_v16  ;;  %v758_v63 = vmul.f32 %v1680_v38, %v1527_v10  ;;  %v1283_v46 = vld [vmem:[%s1500_s12 + $0x70] sm:$0x3] }
  0x67   : > { %v714_v5 = vadd.f32 %v711_v56, %v708_v55  ;;  %v702_v0 = vadd.f32 %v699_v52, %v696_v4  ;;  %v760_v1 = vmul.f32 %v1740_v53, %v1564_v25  ;;  %v764_v2 = vmul.f32 %v1799_v62, %v1573_v30 }
  0x68   : > { %v768_v3 = vmul.f32 %v1680_v38, %v1551_v18  ;;  %v743_v8 = vadd.f32 %v738_v61, %v731_v59  ;;  %v769_v6 = vmul.f32 %v1697_v54, %v1551_v18  ;;  %v771_v7 = vmul.f32 %v1740_v53, %v1566_v26 }
  0x69   : > { %v720_v20 = vadd.f32 %v717_v15, %v714_v5  ;;  %v705_v9 = vadd.f32 %v702_v0, %v1595_v42  ;;  %v762_v21 = vadd.f32 %v760_v1, %v758_v63  ;;  %v772_v22 = vmul.f32 %v1751_v60, %v1566_v26 }
  0x6a   : > { %v777_v27 = vmul.f32 %v1799_v62, %v1582_v34  ;;  %1276 = vst [vmem:[%s1632_s11 + $0x30] sm:$0xff] %v743_v8  ;;  %v774_v12 = vadd.f32 %v771_v7, %v768_v3  ;;  %v778_v24 = vmul.f32 %v1815_v17, %v1582_v34  ;;  %v786_v29 = vmul.f32 %v1680_v38, %v1561_v23 }
  0x6b   : > { %v739_v19 = vrot.slane %v720_v20, 2  ;;  %v727_v28 = vrot.slane %v705_v9, 1  ;;  %v766_v31 = vadd.f32 %v764_v2, %v762_v21  ;;  %v775_v14 = vadd.f32 %v772_v22, %v769_v6  ;;  %v1859_v9 = vld [vmem:[%s1500_s12 + $0x90] sm:$0xff] }
  0x6c   : > { %v787_v32 = vmul.f32 %v1697_v54, %v1561_v23  ;;  %v780_v33 = vadd.f32 %v777_v27, %v774_v12  ;;  %v789_v39 = vmul.f32 %v1740_v53, %v1585_v35  ;;  %v790_v40 = vmul.f32 %v1751_v60, %v1585_v35 }
  0x6d   : > { %v740_v11 = vsel %vm496_vm1, %v737_v16, %v739_v19  ;;  %v728_v38 = vsel %vm483_vm0, %v725_v50, %v727_v28  ;;  %v781_v41 = vadd.f32 %v778_v24, %v775_v14  ;;  %v795_v43 = vmul.f32 %v1799_v62, %v1588_v36 }
  0x6e   : > { %v796_v37 = vmul.f32 %v1815_v17, %v1588_v36  ;;  %v732_v13 = vadd.f32 %v728_v38, %v687_v58  ;;  %v783_v44 = vadd.f32 %v780_v33, %v1595_v42  ;;  %v792_v47 = vadd.f32 %v789_v39, %v786_v29 }
  0x6f   : > { %v793_v48 = vadd.f32 %v790_v40, %v787_v32  ;;  %v784_v51 = vadd.f32 %v781_v41, %v1595_v42  ;;  %v759_v50 = vmul.f32 %v1697_v54, %v1527_v10  ;;  %v761_v16 = vmul.f32 %v1751_v60, %v1564_v25 }
  0x70   : > { %v765_v52 = vmul.f32 %v1815_v17, %v1573_v30  ;;  %v744_v55 = vadd.f32 %v740_v11, %v732_v13  ;;  %v798_v56 = vadd.f32 %v795_v43, %v792_v47  ;;  %v804_v58 = vrot.slane %v783_v44, 1  ;;  %v1875_v11 = vld [vmem:[%s1500_s12 + $0x98] sm:$0xff] }
  0x71   : > { %v799_v57 = vadd.f32 %v796_v37, %v793_v48  ;;  %v805_v4 = vrot.slane %v784_v51, 1  ;;  %v763_v15 = vadd.f32 %v761_v16, %v759_v50  ;;  %v770_v59 = vmul.f32 %v1280_v49, %v1551_v18 }
  0x72   : > { %v773_v61 = vmul.f32 %v1283_v46, %v1566_v26  ;;  %1277 = vst [vmem:[%s1632_s11 + $0x38] sm:$0xff] %v744_v55  ;;  %v816_v5 = vrot.slane %v798_v56, 2  ;;  %v779_v63 = vmul.f32 %v1286_v45, %v1582_v34  ;;  %v788_v0 = vmul.f32 %v1280_v49, %v1561_v23 }
  0x73   : > { %v817_v54 = vrot.slane %v799_v57, 2  ;;  %v806_v1 = vsel %vm483_vm0, %v804_v58, %v805_v4  ;;  %v767_v2 = vadd.f32 %v765_v52, %v763_v15  ;;  %v791_v8 = vmul.f32 %v1283_v46, %v1585_v35  ;;  %v1291_v58 = vld [vmem:[%s1500_s12 + $0x70] sm:$0x3] }
  0x74   : > { %v776_v3 = vadd.f32 %v773_v61, %v770_v59  ;;  %v811_v20 = vadd.f32 %v806_v1, %v766_v31  ;;  %v797_v7 = vmul.f32 %v1286_v45, %v1588_v36  ;;  %v838_v21 = vmul.f32 %v1740_v53, %v1527_v10  ;;  %v1294_v59 = vld [vmem:[%s1500_s12 + $0x88] sm:$0x3]  ;;  %v1297_v61 = vld [vmem:[%s1500_s12 + $0xa0] sm:$0x3] }
  0x75   : > { %v818_v6 = vsel %vm496_vm1, %v816_v5, %v817_v54  ;;  %v794_v27 = vadd.f32 %v791_v8, %v788_v0  ;;  %v840_v19 = vmul.f32 %v1799_v62, %v1564_v25  ;;  %v844_v12 = vmul.f32 %v1859_v9, %v1573_v30 }
  0x76   : > { %v782_v22 = vadd.f32 %v779_v63, %v776_v3  ;;  %v823_v24 = vadd.f32 %v818_v6, %v811_v20  ;;  %v848_v29 = vmul.f32 %v1740_v53, %v1551_v18  ;;  %v849_v28 = vmul.f32 %v1751_v60, %v1551_v18 }
  0x77   : > { %v851_v31 = vmul.f32 %v1799_v62, %v1566_v26  ;;  %v800_v32 = vadd.f32 %v797_v7, %v794_v27  ;;  %v842_v33 = vadd.f32 %v840_v19, %v838_v21  ;;  %v852_v39 = vmul.f32 %v1815_v17, %v1566_v26 }
  0x78   : > { %v785_v14 = vadd.f32 %v782_v22, %v1595_v42  ;;  %1287 = vst [vmem:[%s1632_s11 + $0x40] sm:$0xff] %v823_v24  ;;  %v857_v38 = vmul.f32 %v1859_v9, %v1582_v34  ;;  %v858_v41 = vmul.f32 %v1875_v11, %v1582_v34  ;;  %v866_v43 = vmul.f32 %v1740_v53, %v1561_v23 }
  0x79   : > { %v854_v40 = vadd.f32 %v851_v31, %v848_v29  ;;  %v819_v13 = vrot.slane %v800_v32, 2  ;;  %v846_v44 = vadd.f32 %v844_v12, %v842_v33  ;;  %v855_v47 = vadd.f32 %v852_v39, %v849_v28 }
  0x7a   : > { %v807_v37 = vrot.slane %v785_v14, 1  ;;  %v867_v49 = vmul.f32 %v1751_v60, %v1561_v23  ;;  %v869_v46 = vmul.f32 %v1799_v62, %v1585_v35  ;;  %v870_v51 = vmul.f32 %v1815_v17, %v1585_v35  ;;  %v1934_v14 = vld [vmem:[%s1500_s12 + $0xa8] sm:$0xff] }
  0x7b   : > { %v860_v48 = vadd.f32 %v857_v38, %v854_v40  ;;  %v820_v45 = vsel %vm496_vm1, %v817_v54, %v819_v13  ;;  %v861_v50 = vadd.f32 %v858_v41, %v855_v47  ;;  %v875_v16 = vmul.f32 %v1859_v9, %v1588_v36  ;;  %v1951_v47 = vld [vmem:[%s1500_s12 + $0xb0] sm:$0xff] }
  0x7c   : > { %v808_v53 = vsel %vm483_vm0, %v805_v4, %v807_v37  ;;  %v872_v56 = vadd.f32 %v869_v46, %v866_v43  ;;  %v873_v57 = vadd.f32 %v870_v51, %v867_v49  ;;  %v876_v15 = vmul.f32 %v1875_v11, %v1588_v36 }
  0x7d   : > { %v812_v52 = vadd.f32 %v808_v53, %v767_v2  ;;  %v863_v55 = vadd.f32 %v860_v48, %v1595_v42  ;;  %v1906_v4 = vadd.f32 %v861_v50, %v1595_v42  ;;  %v839_v5 = vmul.f32 %v1751_v60, %v1527_v10 }
  0x7e   : > { %v841_v54 = vmul.f32 %v1815_v17, %v1564_v25  ;;  %v878_v0 = vadd.f32 %v875_v16, %v872_v56  ;;  %v845_v2 = vmul.f32 %v1875_v11, %v1573_v30  ;;  %v879_v3 = vadd.f32 %v876_v15, %v873_v57 }
  0x7f   : > { %v824_v63 = vadd.f32 %v820_v45, %v812_v52  ;;  %v884_v1 = vrot.slane %v863_v55, 1  ;;  %v885_v8 = vrot.slane %v1906_v4, 1  ;;  %v850_v6 = vmul.f32 %v1291_v58, %v1551_v18 }
  0x80   : > { %v843_v20 = vadd.f32 %v841_v54, %v839_v5  ;;  %v896_v7 = vrot.slane %v878_v0, 2  ;;  %v853_v60 = vmul.f32 %v1294_v59, %v1566_v26  ;;  %v859_v21 = vmul.f32 %v1297_v61, %v1582_v34 }
  0x81   : > { %1288 = vst [vmem:[%s1632_s11 + $0x48] sm:$0xff] %v824_v63  ;;  %v868_v22 = vmul.f32 %v1291_v58, %v1561_v23  ;;  %v886_v27 = vsel %vm483_vm0, %v884_v1, %v885_v8  ;;  %v897_v19 = vrot.slane %v879_v3, 2  ;;  %v871_v24 = vmul.f32 %v1294_v59, %v1585_v35 }
  0x82   : > { %v847_v12 = vadd.f32 %v845_v2, %v843_v20  ;;  %v891_v29 = vadd.f32 %v886_v27, %v846_v44  ;;  %v856_v28 = vadd.f32 %v853_v60, %v850_v6  ;;  %v877_v31 = vmul.f32 %v1297_v61, %v1588_v36  ;;  %v1302_v2 = vld [vmem:[%s1500_s12 + $0x88] sm:$0x3] }
  0x83   : > { %v918_v32 = vmul.f32 %v1799_v62, %v1527_v10  ;;  %v898_v33 = vsel %vm496_vm1, %v896_v7, %v897_v19  ;;  %v874_v39 = vadd.f32 %v871_v24, %v868_v22  ;;  %v920_v40 = vmul.f32 %v1859_v9, %v1564_v25  ;;  %v1305_v7 = vld [vmem:[%s1500_s12 + $0xa0] sm:$0x3] }
  0x84   : > { %v924_v38 = vmul.f32 %v1934_v14, %v1573_v30  ;;  %v903_v41 = vadd.f32 %v898_v33, %v891_v29  ;;  %v862_v43 = vadd.f32 %v859_v21, %v856_v28  ;;  %v928_v37 = vmul.f32 %v1799_v62, %v1551_v18 }
  0x85   : > { %v929_v13 = vmul.f32 %v1815_v17, %v1551_v18  ;;  %v880_v44 = vadd.f32 %v877_v31, %v874_v39  ;;  %v922_v48 = vadd.f32 %v920_v40, %v918_v32  ;;  %v931_v49 = vmul.f32 %v1859_v9, %v1566_v26 }
  0x86   : > { %v932_v46 = vmul.f32 %v1875_v11, %v1566_v26  ;;  %1298 = vst [vmem:[%s1632_s11 + $0x50] sm:$0xff] %v903_v41  ;;  %v865_v51 = vadd.f32 %v862_v43, %v1595_v42  ;;  %v937_v53 = vmul.f32 %v1934_v14, %v1582_v34  ;;  %v938_v45 = vmul.f32 %v1951_v47, %v1582_v34  ;;  %v994_v43 = vld [vmem:[%s1996_s17] sm:$0xff] }
  0x87   : > { %v946_v50 = vmul.f32 %v1799_v62, %v1561_v23  ;;  %v899_v16 = vrot.slane %v880_v44, 2  ;;  %v926_v52 = vadd.f32 %v924_v38, %v922_v48  ;;  %v934_v55 = vadd.f32 %v931_v49, %v928_v37  ;;  %v995_v37 = vld [vmem:[%s1996_s17 + $0x8] sm:$0xff] }
  0x88   : > { %v935_v56 = vadd.f32 %v932_v46, %v929_v13  ;;  %v887_v57 = vrot.slane %v865_v51, 1  ;;  %v947_v58 = vmul.f32 %v1815_v17, %v1561_v23  ;;  %v949_v4 = vmul.f32 %v1859_v9, %v1585_v35 }
  0x89   : > { %v950_v15 = vmul.f32 %v1875_v11, %v1585_v35  ;;  %v900_v59 = vsel %vm496_vm1, %v897_v19, %v899_v16  ;;  %v940_v62 = vadd.f32 %v937_v53, %v934_v55  ;;  %v955_v5 = vmul.f32 %v1934_v14, %v1588_v36 }
  0x8a   : > { %v941_v61 = vadd.f32 %v938_v45, %v935_v56  ;;  %v888_v54 = vsel %vm483_vm0, %v885_v8, %v887_v57  ;;  %v952_v63 = vadd.f32 %v949_v4, %v946_v50  ;;  %v956_v1 = vmul.f32 %v1951_v47, %v1588_v36  ;;  %v1308_v8 = vld [vmem:[%s1500_s12 + $0xb8] sm:$0x3] }
  0x8b   : > { %v953_v0 = vadd.f32 %v950_v15, %v947_v58  ;;  %v892_v3 = vadd.f32 %v888_v54, %v847_v12  ;;  %v943_v20 = vadd.f32 %v940_v62, %v1595_v42  ;;  %v919_v60 = vmul.f32 %v1815_v17, %v1527_v10 }
  0x8c   : > { %v944_v6 = vadd.f32 %v941_v61, %v1595_v42  ;;  %v958_v21 = vadd.f32 %v955_v5, %v952_v63  ;;  %v921_v27 = vmul.f32 %v1875_v11, %v1564_v25  ;;  %v925_v19 = vmul.f32 %v1951_v47, %v1573_v30 }
  0x8d   : > { %v959_v22 = vadd.f32 %v956_v1, %v953_v0  ;;  %v904_v12 = vadd.f32 %v900_v59, %v892_v3  ;;  %v964_v24 = vrot.slane %v943_v20, 1  ;;  %v930_v29 = vmul.f32 %v1302_v2, %v1551_v18 }
  0x8e   : > { %v965_v17 = vrot.slane %v944_v6, 1  ;;  %v976_v28 = vrot.slane %v958_v21, 2  ;;  %v923_v32 = vadd.f32 %v921_v27, %v919_v60  ;;  %v933_v33 = vmul.f32 %v1305_v7, %v1566_v26 }
  0x8f   : > { %v977_v31 = vrot.slane %v959_v22, 2  ;;  %1299 = vst [vmem:[%s1632_s11 + $0x58] sm:$0xff] %v904_v12  ;;  %v939_v40 = vmul.f32 %v1308_v8, %v1582_v34  ;;  %v948_v38 = vmul.f32 %v1302_v2, %v1561_v23  ;;  %v951_v41 = vmul.f32 %v1305_v7, %v1585_v35  ;;  %v996_v22 = vld [vmem:[%s1996_s17 + $0x10] sm:$0x3] }
  0x90   : > { %v966_v39 = vsel %vm483_vm0, %v964_v24, %v965_v17  ;;  %v927_v48 = vadd.f32 %v925_v19, %v923_v32  ;;  %v936_v49 = vadd.f32 %v933_v33, %v930_v29  ;;  %v957_v51 = vmul.f32 %v1308_v8, %v1588_v36  ;;  %v1313_v33 = vld [vmem:[%s1500_s12 + $0xa0] sm:$0x3] }
  0x91   : > { %v971_v13 = vadd.f32 %v966_v39, %v926_v52  ;;  %v978_v44 = vsel %vm496_vm1, %v976_v28, %v977_v31  ;;  %v954_v46 = vadd.f32 %v951_v41, %v948_v38  ;;  %v997_v53 = vstv %s402_s18  ;;  %v1316_v39 = vld [vmem:[%s1500_s12 + $0xb8] sm:$0x3] }
  0x92   : > { %v1001_v45 = vmul.f32 %v1859_v9, %v1527_v10  ;;  %v942_v16 = vadd.f32 %v939_v40, %v936_v49  ;;  %v998_v55 = vmul.f32 %v997_v53, %v994_v43  ;;  %v999_v56 = vmul.f32 %v997_v53, %v995_v37 }
  0x93   : > { %v983_v50 = vadd.f32 %v978_v44, %v971_v13  ;;  %v960_v57 = vadd.f32 %v957_v51, %v954_v46  ;;  %v1003_v52 = vmul.f32 %v1934_v14, %v1564_v25  ;;  %v1011_v58 = vmul.f32 %v1859_v9, %v1551_v18 }
  0x94   : > { %v1012_v4 = vmul.f32 %v1875_v11, %v1551_v18  ;;  %v945_v15 = vadd.f32 %v942_v16, %v1595_v42  ;;  %v1007_v59 = vmul.f32 %v998_v55, %v1573_v30  ;;  %v1014_v62 = vmul.f32 %v1934_v14, %v1566_v26 }
  0x95   : > { %1309 = vst [vmem:[%s1632_s11 + $0x60] sm:$0xff] %v983_v50  ;;  %v1015_v61 = vmul.f32 %v1951_v47, %v1566_v26  ;;  %v979_v5 = vrot.slane %v960_v57, 2  ;;  %v1005_v54 = vadd.f32 %v1003_v52, %v1001_v45  ;;  %v1020_v63 = vmul.f32 %v998_v55, %v1582_v34 }
  0x96   : > { %v1021_v0 = vmul.f32 %v999_v56, %v1582_v34  ;;  %v967_v1 = vrot.slane %v945_v15, 1  ;;  %v1017_v2 = vadd.f32 %v1014_v62, %v1011_v58  ;;  %v1029_v20 = vmul.f32 %v1859_v9, %v1561_v23 }
  0x97   : > { %v1018_v3 = vadd.f32 %v1015_v61, %v1012_v4  ;;  %v980_v6 = vsel %vm496_vm1, %v977_v31, %v979_v5  ;;  %v1009_v7 = vadd.f32 %v1007_v59, %v1005_v54  ;;  %v1030_v60 = vmul.f32 %v1875_v11, %v1561_v23 }
  0x98   : > { %v1032_v21 = vmul.f32 %v1934_v14, %v1585_v35  ;;  %v968_v8 = vsel %vm483_vm0, %v965_v17, %v967_v1  ;;  %v1023_v27 = vadd.f32 %v1020_v63, %v1017_v2  ;;  %v1033_v12 = vmul.f32 %v1951_v47, %v1585_v35 }
  0x99   : > { %v1024_v19 = vadd.f32 %v1021_v0, %v1018_v3  ;;  %v972_v9 = vadd.f32 %v968_v8, %v927_v48  ;;  %v1038_v29 = vmul.f32 %v998_v55, %v1588_v36  ;;  %v1039_v28 = vmul.f32 %v999_v56, %v1588_v36 }
  0x9a   : > { %v1035_v24 = vadd.f32 %v1032_v21, %v1029_v20  ;;  %v1026_v31 = vadd.f32 %v1023_v27, %v1595_v42  ;;  %v1036_v14 = vadd.f32 %v1033_v12, %v1030_v60  ;;  %v1000_v17 = vmul.f32 %v997_v53, %v996_v22 }
  0x9b   : > { %v1027_v32 = vadd.f32 %v1024_v19, %v1595_v42  ;;  %v984_v40 = vadd.f32 %v980_v6, %v972_v9  ;;  %v1002_v41 = vmul.f32 %v1875_v11, %v1527_v10  ;;  %v1004_v43 = vmul.f32 %v1951_v47, %v1564_v25 }
  0x9c   : > { %v1041_v38 = vadd.f32 %v1038_v29, %v1035_v24  ;;  %v1042_v37 = vadd.f32 %v1039_v28, %v1036_v14  ;;  %v1047_v13 = vrot.slane %v1026_v31, 1  ;;  %v1008_v48 = vmul.f32 %v999_v56, %v1573_v30 }
  0x9d   : > { %v1048_v44 = vrot.slane %v1027_v32, 1  ;;  %1310 = vst [vmem:[%s1632_s11 + $0x68] sm:$0xff] %v984_v40  ;;  %v1006_v46 = vadd.f32 %v1004_v43, %v1002_v41  ;;  %v1013_v51 = vmul.f32 %v1313_v33, %v1551_v18  ;;  %v1016_v53 = vmul.f32 %v1316_v39, %v1566_v26 }
  0x9e   : > { %v1059_v49 = vrot.slane %v1041_v38, 2  ;;  %v1060_v50 = vrot.slane %v1042_v37, 2  ;;  %v1022_v10 = vmul.f32 %v1000_v17, %v1582_v34  ;;  %v1031_v25 = vmul.f32 %v1313_v33, %v1561_v23 }
  0x9f   : > { %v1049_v45 = vsel %vm483_vm0, %v1047_v13, %v1048_v44  ;;  %v1010_v47 = vadd.f32 %v1008_v48, %v1006_v46  ;;  %v1019_v16 = vadd.f32 %v1016_v53, %v1013_v51  ;;  %v1034_v30 = vmul.f32 %v1316_v39, %v1585_v35 }
  0xa0   : > { %v1054_v11 = vadd.f32 %v1049_v45, %v1009_v7  ;;  %v1061_v55 = vsel %vm496_vm1, %v1059_v49, %v1060_v50  ;;  %v1040_v56 = vmul.f32 %v1000_v17, %v1588_v36 }
  0xa1   : > { %v1025_v57 = vadd.f32 %v1022_v10, %v1019_v16  ;;  %v1037_v26 = vadd.f32 %v1034_v30, %v1031_v25 }
  0xa2   : > { %v1066_v18 = vadd.f32 %v1061_v55, %v1054_v11 }
  0xa3   : > { %v1028_v52 = vadd.f32 %v1025_v57, %v1595_v42  ;;  %v1043_v58 = vadd.f32 %v1040_v56, %v1037_v26 }
  0xa4   : > { %1317 = vst [vmem:[%s1632_s11 + $0x70] sm:$0xff] %v1066_v18 }
  0xa5   : > { %v1050_v34 = vrot.slane %v1028_v52, 1  ;;  %v1062_v4 = vrot.slane %v1043_v58, 2 }
  0xa7   : > { %v1051_v23 = vsel %vm483_vm0, %v1048_v44, %v1050_v34  ;;  %v1063_v15 = vsel %vm496_vm1, %v1060_v50, %v1062_v4 }
  0xa8   : > { %v1055_v59 = vadd.f32 %v1051_v23, %v1010_v47 }
  0xaa   : > { %v1067_v62 = vadd.f32 %v1063_v15, %v1055_v59 }
  0xac   : > { %1318 = vst [vmem:[%s1632_s11 + $0x78] sm:$0xff] %v1067_v62 }
  0xad PF: > { %s17_s22 = sadd.s32 1, %s1409_s22   ;;  %s2081_s20 = smov %s1405_s21 }
  0xae   : > { %p14_p7 = scmp.ge.s32.totalorder %s17_s22, 4   ;;  %s2082_s21 = smov %s2084_s23 }
  0xb0   :  { %16 = sbr.rel (!%p14_p7) target bundleno = 4 (0x4), region = 95 }
  0xb7   :  { %1101 = vsyncpa [#allocation4], 1 }
  0xb8   :  { %1103 = vsyncpa [#allocation4 + $0x1], 1 }

</bundles_post_ra>
